<compile_context>
chip_gen: v6e
topology: v6e:2x2x1
jax: 0.10.0
libtpu: 0.0.40
codegen_flags: <defaults>
</compile_context>

<pallas_src>
import jax
import jax.numpy as jnp
from jax import lax
from jax.experimental import pallas as pl
from jax.experimental.pallas import tpu as pltpu


# ----------------------------------------------------------------------------
# Fused kernel: stacked tanh-RNN layers + post Linear + SelfAttention + output
# Linear, whole batch in one kernel instance.
# ----------------------------------------------------------------------------
def _make_fused_kernel(B, S, I, H, O, num_layers):
    def kernel(*refs):
        it = iter(refs)
        x_ref = next(it)                                   # (S*B, in)  time-major flat
        layers = [(next(it), next(it), next(it)) for _ in range(num_layers)]
        pw_ref = next(it)                                  # (H, I)   post W^T
        pb_ref = next(it)                                  # (1, I)
        qkvw_ref = next(it)                                # (I, 3I)  packed q/k/v W^T
        qkvb_ref = next(it)                                # (1, 3I)
        ow_ref = next(it)                                  # (S, I, O) output W reshaped
        ob_ref = next(it)                                  # (1, O)
        logits_ref = next(it)                              # (B, O)
        attn_ref = next(it)                                # (B, I, I)

        act = x_ref[...].astype(jnp.float32)               # (S*B, in_dim), time-major

        # ---- stacked tanh-RNN layers (time-major, batched over B) --------
        for li, (wih_ref, whh_ref, b_ref) in enumerate(layers):
            # non-recurrent input projection for all (t, b) at once (M = S*B)
            xw = jnp.dot(act, wih_ref[...],
                         preferred_element_type=jnp.float32) + b_ref[...]
            whh_t = whh_ref[...]                           # (H, H), pre-transposed
            h = jnp.zeros((B, H), jnp.float32)
            hs = []
            for t in range(S):                             # serial chain: S steps
                h = jnp.tanh(
                    xw[t * B:(t + 1) * B, :]
                    + jnp.dot(h, whh_t, preferred_element_type=jnp.float32))
                hs.append(h)                               # (B, H) per step
            if li + 1 < num_layers:
                act = jnp.concatenate(hs, axis=0)          # (S*B, H) time-major
            else:
                # final layer: emit batch-major rows so attention slices are
                # contiguous (no transpose/reshape relayout later)
                act = jnp.concatenate(
                    [hs[t][b:b + 1, :] for b in range(B) for t in range(S)],
                    axis=0)                                # (B*S, H) batch-major

        # ---- post layer + packed q/k/v projection (M = B*S) --------------
        post = jnp.dot(act, pw_ref[...],
                       preferred_element_type=jnp.float32) + pb_ref[...]
        qkv = jnp.dot(post, qkvw_ref[...],
                      preferred_element_type=jnp.float32) + qkvb_ref[...]
        q = qkv[:, 0 * I:1 * I]
        k = qkv[:, 1 * I:2 * I]
        v = qkv[:, 2 * I:3 * I]

        ob = ob_ref[...]                                   # (1, O)
        attn_list, logits_list = [], []
        for b in range(B):
            qb = q[b * S:(b + 1) * S, :]                   # (S, I) contiguous slices
            kb = k[b * S:(b + 1) * S, :]
            vb = v[b * S:(b + 1) * S, :]
            # energy = q^T k: contract over time dim without explicit transpose
            energy = lax.dot_general(qb, kb, (((0,), (0,)), ((), ())),
                                     preferred_element_type=jnp.float32)   # (I, I)
            energy = energy - jnp.max(energy, axis=-1, keepdims=True)
            e = jnp.exp(energy)
            attn = e / jnp.sum(e, axis=-1, keepdims=True)                   # (I, I)
            attn_list.append(attn)
            out_b = jnp.dot(vb, attn, preferred_element_type=jnp.float32)   # (S, I)
            # output Linear: logits = b + sum_s out_b[s] @ W[s]
            lg = ob
            for s in range(S):
                lg = lg + jnp.dot(out_b[s:s + 1, :], ow_ref[s],
                                  preferred_element_type=jnp.float32)       # (1, O)
            logits_list.append(lg)

        logits_ref[...] = jnp.concatenate(logits_list, axis=0).astype(logits_ref.dtype)
        attn_ref[...] = jnp.stack(attn_list, axis=0).astype(attn_ref.dtype)

    return kernel


# ----------------------------------------------------------------------------
# Host-side parameter repacking (one-time): transpose weights, pack q/k/v,
# reshape output weight to (S, I, O).
# ----------------------------------------------------------------------------
def prepare_kernel_params(params):
    layers = []
    for (w_ih, w_hh, b) in params["rnn_layers"]:
        layers.append((jnp.transpose(w_ih), jnp.transpose(w_hh), b))   # (in,H),(H,H),(1,H)

    q_w, k_w, v_w = params["q_w"], params["k_w"], params["v_w"]
    I = q_w.shape[0]
    qkv_w_t = jnp.concatenate([q_w.T, k_w.T, v_w.T], axis=1)           # (I, 3I)
    qkv_b = jnp.concatenate([params["q_b"], params["k_b"], params["v_b"]], axis=1)

    out_w = params["out_w"]                                            # (O, S*I)
    O = out_w.shape[0]
    S = out_w.shape[1] // I
    out_w_sio = out_w.reshape(O, S, I).transpose(1, 2, 0)              # (S, I, O)

    return {
        "rnn_layers": layers,
        "post_w_t": jnp.transpose(params["post_w"]),                   # (H, I)
        "post_b": params["post_b"],                                    # (1, I)
        "qkv_w_t": qkv_w_t,
        "qkv_b": qkv_b,
        "out_w_sio": out_w_sio,
        "out_b": params["out_b"],                                      # (1, O)
    }


# ----------------------------------------------------------------------------
# Forward pass: one fused pallas_call.
# ----------------------------------------------------------------------------
def rnn_base_forward(batch, kparams):
    B, S, I = batch.shape
    H = kparams["rnn_layers"][0][1].shape[0]
    O = kparams["out_b"].shape[1]
    L = len(kparams["rnn_layers"])

    # time-major flatten (host side): row index = t*B + b
    x_tm = jnp.transpose(batch, (1, 0, 2)).reshape(S * B, I).astype(jnp.float32)

    inputs = [x_tm]
    in_specs = [pl.BlockSpec((S * B, I), lambda i: (0, 0))]
    for (wih_t, whh_t, b) in kparams["rnn_layers"]:
        inputs += [wih_t, whh_t, b]
        in_specs += [
            pl.BlockSpec(wih_t.shape, lambda i: (0, 0)),
            pl.BlockSpec(whh_t.shape, lambda i: (0, 0)),
            pl.BlockSpec(b.shape, lambda i: (0, 0)),
        ]
    inputs += [kparams["post_w_t"], kparams["post_b"],
               kparams["qkv_w_t"], kparams["qkv_b"],
               kparams["out_w_sio"], kparams["out_b"]]
    in_specs += [
        pl.BlockSpec(kparams["post_w_t"].shape, lambda i: (0, 0)),
        pl.BlockSpec(kparams["post_b"].shape, lambda i: (0, 0)),
        pl.BlockSpec(kparams["qkv_w_t"].shape, lambda i: (0, 0)),
        pl.BlockSpec(kparams["qkv_b"].shape, lambda i: (0, 0)),
        pl.BlockSpec(kparams["out_w_sio"].shape, lambda i: (0, 0, 0)),
        pl.BlockSpec(kparams["out_b"].shape, lambda i: (0, 0)),
    ]

    kernel = _make_fused_kernel(B, S, I, H, O, L)
    logits, attn = pl.pallas_call(
        kernel,
        out_shape=(
            jax.ShapeDtypeStruct((B, O), jnp.float32),
            jax.ShapeDtypeStruct((B, I, I), jnp.float32),
        ),
        grid_spec=pltpu.PrefetchScalarGridSpec(
            num_scalar_prefetch=0,
            grid=(1,),
            in_specs=in_specs,
            out_specs=(
                pl.BlockSpec((B, O), lambda i: (0, 0)),
                pl.BlockSpec((B, I, I), lambda i: (0, 0, 0)),
            ),
        ),
        compiler_params=pltpu.CompilerParams(dimension_semantics=("arbitrary",)),
    )(*inputs)
    return logits, attn


# ----------------------------------------------------------------------------
# Pure-JAX reference (same math, no Pallas) for correctness checking
# ----------------------------------------------------------------------------
def rnn_base_reference(batch, params):
    h = batch
    for (w_ih, w_hh, b) in params["rnn_layers"]:
        B, S, _ = h.shape
        H = w_hh.shape[0]
        hs = jnp.zeros((B, H), jnp.float32)
        outs = []
        for t in range(S):
            hs = jnp.tanh(h[:, t] @ w_ih.T + hs @ w_hh.T + b[0])
            outs.append(hs)
        h = jnp.stack(outs, axis=1)
    post = h @ params["post_w"].T + params["post_b"][0]
    q = post @ params["q_w"].T + params["q_b"][0]
    k = post @ params["k_w"].T + params["k_b"][0]
    v = post @ params["v_w"].T + params["v_b"][0]
    energy = jnp.einsum("bsi,bsj->bij", q, k)
    attn = jax.nn.softmax(energy, axis=-1)
    out = jnp.einsum("bsi,bij->bsj", v, attn)
    flat = out.reshape(out.shape[0], -1)
    logits = flat @ params["out_w"].T + params["out_b"][0]
    return logits, attn


def init_params(key, input_size, seq_len, hidden_size, num_layers, output_size):
    def uniform(k, shape, fan_in):
        bound = 1.0 / jnp.sqrt(jnp.float32(fan_in))
        return jax.random.uniform(k, shape, jnp.float32, -bound, bound)

    keys = iter(jax.random.split(key, 64))
    rnn_layers = []
    for l in range(num_layers):
        in_dim = input_size if l == 0 else hidden_size
        w_ih = uniform(next(keys), (hidden_size, in_dim), hidden_size)
        w_hh = uniform(next(keys), (hidden_size, hidden_size), hidden_size)
        b_ih = uniform(next(keys), (hidden_size,), hidden_size)
        b_hh = uniform(next(keys), (hidden_size,), hidden_size)
        rnn_layers.append((w_ih, w_hh, (b_ih + b_hh).reshape(1, hidden_size)))

    params = {
        "rnn_layers": rnn_layers,
        "post_w": uniform(next(keys), (input_size, hidden_size), hidden_size),
        "post_b": uniform(next(keys), (1, input_size), hidden_size),
        "q_w": uniform(next(keys), (input_size, input_size), input_size),
        "q_b": uniform(next(keys), (1, input_size), input_size),
        "k_w": uniform(next(keys), (input_size, input_size), input_size),
        "k_b": uniform(next(keys), (1, input_size), input_size),
        "v_w": uniform(next(keys), (input_size, input_size), input_size),
        "v_b": uniform(next(keys), (1, input_size), input_size),
        "out_w": uniform(next(keys), (output_size, input_size * seq_len),
                         input_size * seq_len),
        "out_b": uniform(next(keys), (1, output_size), input_size * seq_len),
    }
    return params


if __name__ == "__main__":
    # config: hidden_size=32, num_layers=2, output_size=8, bias=True,
    #         dropout=0.0, bidirectional=False, self_attention=True
    B, S, I = 2, 8, 16
    H, L, O = 32, 2, 8

    key = jax.random.PRNGKey(0)
    kx, kp = jax.random.split(key)
    batch = jax.random.normal(kx, (B, S, I), jnp.float32)
    params = init_params(kp, I, S, H, L, O)
    kparams = prepare_kernel_params(params)

    logits, attn = rnn_base_forward(batch, kparams)
    logits = jax.block_until_ready(logits)
    attn = jax.block_until_ready(attn)

    ref_logits, ref_attn = rnn_base_reference(batch, params)

    assert logits.shape == (B, O), logits.shape
    assert attn.shape == (B, I, I), attn.shape
    assert jnp.allclose(logits, ref_logits, atol=1e-4, rtol=1e-4)
    assert jnp.allclose(attn, ref_attn, atol=1e-4, rtol=1e-4)

    print("KERNEL_OK")
</pallas_src>

<mosaic_0001>
module attributes {stable_mosaic.version = 11 : i64} {
  func.func @kernel(%arg0: i32, %arg1: memref<16x16xf32, #tpu.memory_space<vmem>>, %arg2: memref<16x32xf32, #tpu.memory_space<vmem>>, %arg3: memref<32x32xf32, #tpu.memory_space<vmem>>, %arg4: memref<1x32xf32, #tpu.memory_space<vmem>>, %arg5: memref<32x32xf32, #tpu.memory_space<vmem>>, %arg6: memref<32x32xf32, #tpu.memory_space<vmem>>, %arg7: memref<1x32xf32, #tpu.memory_space<vmem>>, %arg8: memref<32x16xf32, #tpu.memory_space<vmem>>, %arg9: memref<1x16xf32, #tpu.memory_space<vmem>>, %arg10: memref<16x48xf32, #tpu.memory_space<vmem>>, %arg11: memref<1x48xf32, #tpu.memory_space<vmem>>, %arg12: memref<8x16x8xf32, #tpu.memory_space<vmem>>, %arg13: memref<1x8xf32, #tpu.memory_space<vmem>>, %arg14: memref<2x8xf32, #tpu.memory_space<vmem>>, %arg15: memref<2x16x16xf32, #tpu.memory_space<vmem>>) attributes {dimension_semantics = [#tpu.dimension_semantics<arbitrary>], iteration_bounds = array<i64: 1>, scalar_prefetch = 0 : i64, scratch_operands = 0 : i64, tpu.core_type = #tpu.core_type<tc>, window_params = [{pipeline_mode = #tpu.pipeline_mode<synchronous>, transform_indices = @transform_0, window_bounds = array<i64: 16, 16>}, {pipeline_mode = #tpu.pipeline_mode<synchronous>, transform_indices = @transform_1, window_bounds = array<i64: 16, 32>}, {pipeline_mode = #tpu.pipeline_mode<synchronous>, transform_indices = @transform_2, window_bounds = array<i64: 32, 32>}, {pipeline_mode = #tpu.pipeline_mode<synchronous>, transform_indices = @transform_3, window_bounds = array<i64: 1, 32>}, {pipeline_mode = #tpu.pipeline_mode<synchronous>, transform_indices = @transform_4, window_bounds = array<i64: 32, 32>}, {pipeline_mode = #tpu.pipeline_mode<synchronous>, transform_indices = @transform_5, window_bounds = array<i64: 32, 32>}, {pipeline_mode = #tpu.pipeline_mode<synchronous>, transform_indices = @transform_6, window_bounds = array<i64: 1, 32>}, {pipeline_mode = #tpu.pipeline_mode<synchronous>, transform_indices = @transform_7, window_bounds = array<i64: 32, 16>}, {pipeline_mode = #tpu.pipeline_mode<synchronous>, transform_indices = @transform_8, window_bounds = array<i64: 1, 16>}, {pipeline_mode = #tpu.pipeline_mode<synchronous>, transform_indices = @transform_9, window_bounds = array<i64: 16, 48>}, {pipeline_mode = #tpu.pipeline_mode<synchronous>, transform_indices = @transform_10, window_bounds = array<i64: 1, 48>}, {pipeline_mode = #tpu.pipeline_mode<synchronous>, transform_indices = @transform_11, window_bounds = array<i64: 8, 16, 8>}, {pipeline_mode = #tpu.pipeline_mode<synchronous>, transform_indices = @transform_12, window_bounds = array<i64: 1, 8>}, {pipeline_mode = #tpu.pipeline_mode<synchronous>, transform_indices = @transform_13, window_bounds = array<i64: 2, 8>}, {pipeline_mode = #tpu.pipeline_mode<synchronous>, transform_indices = @transform_14, window_bounds = array<i64: 2, 16, 16>}]} {
    %c0 = arith.constant 0 : index
    %c0_0 = arith.constant 0 : index
    %0 = vector.load %arg1[%c0, %c0_0] : memref<16x16xf32, #tpu.memory_space<vmem>>, vector<16x16xf32>
    %c0_1 = arith.constant 0 : index
    %c0_2 = arith.constant 0 : index
    %1 = vector.load %arg2[%c0_1, %c0_2] : memref<16x32xf32, #tpu.memory_space<vmem>>, vector<16x32xf32>
    %cst = arith.constant dense<0.000000e+00> : vector<16x32xf32>
    %2 = tpu.matmul %0, %1, %cst {dimension_numbers = #tpu.dot_dimension_numbers<[1], [0], [0], [1], [0, 0, 1, 1], [], []>} : vector<16x16xf32>, vector<16x32xf32>, vector<16x32xf32> -> vector<16x32xf32>
    %c0_3 = arith.constant 0 : index
    %c0_4 = arith.constant 0 : index
    %3 = vector.load %arg4[%c0_3, %c0_4] : memref<1x32xf32, #tpu.memory_space<vmem>>, vector<1x32xf32>
    %4 = vector.broadcast %3 : vector<1x32xf32> to vector<16x32xf32>
    %5 = arith.addf %2, %4 : vector<16x32xf32>
    %c0_5 = arith.constant 0 : index
    %c0_6 = arith.constant 0 : index
    %6 = vector.load %arg3[%c0_5, %c0_6] : memref<32x32xf32, #tpu.memory_space<vmem>>, vector<32x32xf32>
    %cst_7 = arith.constant 0.000000e+00 : f32
    %7 = vector.broadcast %cst_7 : f32 to vector<2x32xf32>
    %8 = vector.extract_strided_slice %5 {offsets = [0, 0], sizes = [2, 32], strides = [1, 1]} : vector<16x32xf32> to vector<2x32xf32>
    %cst_8 = arith.constant dense<0.000000e+00> : vector<2x32xf32>
    %9 = tpu.matmul %7, %6, %cst_8 {dimension_numbers = #tpu.dot_dimension_numbers<[1], [0], [0], [1], [0, 0, 1, 1], [], []>} : vector<2x32xf32>, vector<32x32xf32>, vector<2x32xf32> -> vector<2x32xf32>
    %10 = arith.addf %8, %9 : vector<2x32xf32>
    %11 = math.tanh %10 : vector<2x32xf32>
    %12 = vector.extract_strided_slice %5 {offsets = [2, 0], sizes = [2, 32], strides = [1, 1]} : vector<16x32xf32> to vector<2x32xf32>
    %cst_9 = arith.constant dense<0.000000e+00> : vector<2x32xf32>
    %13 = tpu.matmul %11, %6, %cst_9 {dimension_numbers = #tpu.dot_dimension_numbers<[1], [0], [0], [1], [0, 0, 1, 1], [], []>} : vector<2x32xf32>, vector<32x32xf32>, vector<2x32xf32> -> vector<2x32xf32>
    %14 = arith.addf %12, %13 : vector<2x32xf32>
    %15 = math.tanh %14 : vector<2x32xf32>
    %16 = vector.extract_strided_slice %5 {offsets = [4, 0], sizes = [2, 32], strides = [1, 1]} : vector<16x32xf32> to vector<2x32xf32>
    %cst_10 = arith.constant dense<0.000000e+00> : vector<2x32xf32>
    %17 = tpu.matmul %15, %6, %cst_10 {dimension_numbers = #tpu.dot_dimension_numbers<[1], [0], [0], [1], [0, 0, 1, 1], [], []>} : vector<2x32xf32>, vector<32x32xf32>, vector<2x32xf32> -> vector<2x32xf32>
    %18 = arith.addf %16, %17 : vector<2x32xf32>
    %19 = math.tanh %18 : vector<2x32xf32>
    %20 = vector.extract_strided_slice %5 {offsets = [6, 0], sizes = [2, 32], strides = [1, 1]} : vector<16x32xf32> to vector<2x32xf32>
    %cst_11 = arith.constant dense<0.000000e+00> : vector<2x32xf32>
    %21 = tpu.matmul %19, %6, %cst_11 {dimension_numbers = #tpu.dot_dimension_numbers<[1], [0], [0], [1], [0, 0, 1, 1], [], []>} : vector<2x32xf32>, vector<32x32xf32>, vector<2x32xf32> -> vector<2x32xf32>
    %22 = arith.addf %20, %21 : vector<2x32xf32>
    %23 = math.tanh %22 : vector<2x32xf32>
    %24 = vector.extract_strided_slice %5 {offsets = [8, 0], sizes = [2, 32], strides = [1, 1]} : vector<16x32xf32> to vector<2x32xf32>
    %cst_12 = arith.constant dense<0.000000e+00> : vector<2x32xf32>
    %25 = tpu.matmul %23, %6, %cst_12 {dimension_numbers = #tpu.dot_dimension_numbers<[1], [0], [0], [1], [0, 0, 1, 1], [], []>} : vector<2x32xf32>, vector<32x32xf32>, vector<2x32xf32> -> vector<2x32xf32>
    %26 = arith.addf %24, %25 : vector<2x32xf32>
    %27 = math.tanh %26 : vector<2x32xf32>
    %28 = vector.extract_strided_slice %5 {offsets = [10, 0], sizes = [2, 32], strides = [1, 1]} : vector<16x32xf32> to vector<2x32xf32>
    %cst_13 = arith.constant dense<0.000000e+00> : vector<2x32xf32>
    %29 = tpu.matmul %27, %6, %cst_13 {dimension_numbers = #tpu.dot_dimension_numbers<[1], [0], [0], [1], [0, 0, 1, 1], [], []>} : vector<2x32xf32>, vector<32x32xf32>, vector<2x32xf32> -> vector<2x32xf32>
    %30 = arith.addf %28, %29 : vector<2x32xf32>
    %31 = math.tanh %30 : vector<2x32xf32>
    %32 = vector.extract_strided_slice %5 {offsets = [12, 0], sizes = [2, 32], strides = [1, 1]} : vector<16x32xf32> to vector<2x32xf32>
    %cst_14 = arith.constant dense<0.000000e+00> : vector<2x32xf32>
    %33 = tpu.matmul %31, %6, %cst_14 {dimension_numbers = #tpu.dot_dimension_numbers<[1], [0], [0], [1], [0, 0, 1, 1], [], []>} : vector<2x32xf32>, vector<32x32xf32>, vector<2x32xf32> -> vector<2x32xf32>
    %34 = arith.addf %32, %33 : vector<2x32xf32>
    %35 = math.tanh %34 : vector<2x32xf32>
    %36 = vector.extract_strided_slice %5 {offsets = [14, 0], sizes = [2, 32], strides = [1, 1]} : vector<16x32xf32> to vector<2x32xf32>
    %cst_15 = arith.constant dense<0.000000e+00> : vector<2x32xf32>
    %37 = tpu.matmul %35, %6, %cst_15 {dimension_numbers = #tpu.dot_dimension_numbers<[1], [0], [0], [1], [0, 0, 1, 1], [], []>} : vector<2x32xf32>, vector<32x32xf32>, vector<2x32xf32> -> vector<2x32xf32>
    %38 = arith.addf %36, %37 : vector<2x32xf32>
    %39 = math.tanh %38 : vector<2x32xf32>
    %40 = tpu.concatenate %11, %15, %19, %23, %27, %31, %35, %39 in 0 : vector<2x32xf32>, vector<2x32xf32>, vector<2x32xf32>, vector<2x32xf32>, vector<2x32xf32>, vector<2x32xf32>, vector<2x32xf32>, vector<2x32xf32> -> vector<16x32xf32>
    %c0_16 = arith.constant 0 : index
    %c0_17 = arith.constant 0 : index
    %41 = vector.load %arg5[%c0_16, %c0_17] : memref<32x32xf32, #tpu.memory_space<vmem>>, vector<32x32xf32>
    %cst_18 = arith.constant dense<0.000000e+00> : vector<16x32xf32>
    %42 = tpu.matmul %40, %41, %cst_18 {dimension_numbers = #tpu.dot_dimension_numbers<[1], [0], [0], [1], [0, 0, 1, 1], [], []>} : vector<16x32xf32>, vector<32x32xf32>, vector<16x32xf32> -> vector<16x32xf32>
    %c0_19 = arith.constant 0 : index
    %c0_20 = arith.constant 0 : index
    %43 = vector.load %arg7[%c0_19, %c0_20] : memref<1x32xf32, #tpu.memory_space<vmem>>, vector<1x32xf32>
    %44 = vector.broadcast %43 : vector<1x32xf32> to vector<16x32xf32>
    %45 = arith.addf %42, %44 : vector<16x32xf32>
    %c0_21 = arith.constant 0 : index
    %c0_22 = arith.constant 0 : index
    %46 = vector.load %arg6[%c0_21, %c0_22] : memref<32x32xf32, #tpu.memory_space<vmem>>, vector<32x32xf32>
    %cst_23 = arith.constant 0.000000e+00 : f32
    %47 = vector.broadcast %cst_23 : f32 to vector<2x32xf32>
    %48 = vector.extract_strided_slice %45 {offsets = [0, 0], sizes = [2, 32], strides = [1, 1]} : vector<16x32xf32> to vector<2x32xf32>
    %cst_24 = arith.constant dense<0.000000e+00> : vector<2x32xf32>
    %49 = tpu.matmul %47, %46, %cst_24 {dimension_numbers = #tpu.dot_dimension_numbers<[1], [0], [0], [1], [0, 0, 1, 1], [], []>} : vector<2x32xf32>, vector<32x32xf32>, vector<2x32xf32> -> vector<2x32xf32>
    %50 = arith.addf %48, %49 : vector<2x32xf32>
    %51 = math.tanh %50 : vector<2x32xf32>
    %52 = vector.extract_strided_slice %45 {offsets = [2, 0], sizes = [2, 32], strides = [1, 1]} : vector<16x32xf32> to vector<2x32xf32>
    %cst_25 = arith.constant dense<0.000000e+00> : vector<2x32xf32>
    %53 = tpu.matmul %51, %46, %cst_25 {dimension_numbers = #tpu.dot_dimension_numbers<[1], [0], [0], [1], [0, 0, 1, 1], [], []>} : vector<2x32xf32>, vector<32x32xf32>, vector<2x32xf32> -> vector<2x32xf32>
    %54 = arith.addf %52, %53 : vector<2x32xf32>
    %55 = math.tanh %54 : vector<2x32xf32>
    %56 = vector.extract_strided_slice %45 {offsets = [4, 0], sizes = [2, 32], strides = [1, 1]} : vector<16x32xf32> to vector<2x32xf32>
    %cst_26 = arith.constant dense<0.000000e+00> : vector<2x32xf32>
    %57 = tpu.matmul %55, %46, %cst_26 {dimension_numbers = #tpu.dot_dimension_numbers<[1], [0], [0], [1], [0, 0, 1, 1], [], []>} : vector<2x32xf32>, vector<32x32xf32>, vector<2x32xf32> -> vector<2x32xf32>
    %58 = arith.addf %56, %57 : vector<2x32xf32>
    %59 = math.tanh %58 : vector<2x32xf32>
    %60 = vector.extract_strided_slice %45 {offsets = [6, 0], sizes = [2, 32], strides = [1, 1]} : vector<16x32xf32> to vector<2x32xf32>
    %cst_27 = arith.constant dense<0.000000e+00> : vector<2x32xf32>
    %61 = tpu.matmul %59, %46, %cst_27 {dimension_numbers = #tpu.dot_dimension_numbers<[1], [0], [0], [1], [0, 0, 1, 1], [], []>} : vector<2x32xf32>, vector<32x32xf32>, vector<2x32xf32> -> vector<2x32xf32>
    %62 = arith.addf %60, %61 : vector<2x32xf32>
    %63 = math.tanh %62 : vector<2x32xf32>
    %64 = vector.extract_strided_slice %45 {offsets = [8, 0], sizes = [2, 32], strides = [1, 1]} : vector<16x32xf32> to vector<2x32xf32>
    %cst_28 = arith.constant dense<0.000000e+00> : vector<2x32xf32>
    %65 = tpu.matmul %63, %46, %cst_28 {dimension_numbers = #tpu.dot_dimension_numbers<[1], [0], [0], [1], [0, 0, 1, 1], [], []>} : vector<2x32xf32>, vector<32x32xf32>, vector<2x32xf32> -> vector<2x32xf32>
    %66 = arith.addf %64, %65 : vector<2x32xf32>
    %67 = math.tanh %66 : vector<2x32xf32>
    %68 = vector.extract_strided_slice %45 {offsets = [10, 0], sizes = [2, 32], strides = [1, 1]} : vector<16x32xf32> to vector<2x32xf32>
    %cst_29 = arith.constant dense<0.000000e+00> : vector<2x32xf32>
    %69 = tpu.matmul %67, %46, %cst_29 {dimension_numbers = #tpu.dot_dimension_numbers<[1], [0], [0], [1], [0, 0, 1, 1], [], []>} : vector<2x32xf32>, vector<32x32xf32>, vector<2x32xf32> -> vector<2x32xf32>
    %70 = arith.addf %68, %69 : vector<2x32xf32>
    %71 = math.tanh %70 : vector<2x32xf32>
    %72 = vector.extract_strided_slice %45 {offsets = [12, 0], sizes = [2, 32], strides = [1, 1]} : vector<16x32xf32> to vector<2x32xf32>
    %cst_30 = arith.constant dense<0.000000e+00> : vector<2x32xf32>
    %73 = tpu.matmul %71, %46, %cst_30 {dimension_numbers = #tpu.dot_dimension_numbers<[1], [0], [0], [1], [0, 0, 1, 1], [], []>} : vector<2x32xf32>, vector<32x32xf32>, vector<2x32xf32> -> vector<2x32xf32>
    %74 = arith.addf %72, %73 : vector<2x32xf32>
    %75 = math.tanh %74 : vector<2x32xf32>
    %76 = vector.extract_strided_slice %45 {offsets = [14, 0], sizes = [2, 32], strides = [1, 1]} : vector<16x32xf32> to vector<2x32xf32>
    %cst_31 = arith.constant dense<0.000000e+00> : vector<2x32xf32>
    %77 = tpu.matmul %75, %46, %cst_31 {dimension_numbers = #tpu.dot_dimension_numbers<[1], [0], [0], [1], [0, 0, 1, 1], [], []>} : vector<2x32xf32>, vector<32x32xf32>, vector<2x32xf32> -> vector<2x32xf32>
    %78 = arith.addf %76, %77 : vector<2x32xf32>
    %79 = math.tanh %78 : vector<2x32xf32>
    %80 = vector.extract_strided_slice %51 {offsets = [0, 0], sizes = [1, 32], strides = [1, 1]} : vector<2x32xf32> to vector<1x32xf32>
    %81 = vector.extract_strided_slice %55 {offsets = [0, 0], sizes = [1, 32], strides = [1, 1]} : vector<2x32xf32> to vector<1x32xf32>
    %82 = vector.extract_strided_slice %59 {offsets = [0, 0], sizes = [1, 32], strides = [1, 1]} : vector<2x32xf32> to vector<1x32xf32>
    %83 = vector.extract_strided_slice %63 {offsets = [0, 0], sizes = [1, 32], strides = [1, 1]} : vector<2x32xf32> to vector<1x32xf32>
    %84 = vector.extract_strided_slice %67 {offsets = [0, 0], sizes = [1, 32], strides = [1, 1]} : vector<2x32xf32> to vector<1x32xf32>
    %85 = vector.extract_strided_slice %71 {offsets = [0, 0], sizes = [1, 32], strides = [1, 1]} : vector<2x32xf32> to vector<1x32xf32>
    %86 = vector.extract_strided_slice %75 {offsets = [0, 0], sizes = [1, 32], strides = [1, 1]} : vector<2x32xf32> to vector<1x32xf32>
    %87 = vector.extract_strided_slice %79 {offsets = [0, 0], sizes = [1, 32], strides = [1, 1]} : vector<2x32xf32> to vector<1x32xf32>
    %88 = vector.extract_strided_slice %51 {offsets = [1, 0], sizes = [1, 32], strides = [1, 1]} : vector<2x32xf32> to vector<1x32xf32>
    %89 = vector.extract_strided_slice %55 {offsets = [1, 0], sizes = [1, 32], strides = [1, 1]} : vector<2x32xf32> to vector<1x32xf32>
    %90 = vector.extract_strided_slice %59 {offsets = [1, 0], sizes = [1, 32], strides = [1, 1]} : vector<2x32xf32> to vector<1x32xf32>
    %91 = vector.extract_strided_slice %63 {offsets = [1, 0], sizes = [1, 32], strides = [1, 1]} : vector<2x32xf32> to vector<1x32xf32>
    %92 = vector.extract_strided_slice %67 {offsets = [1, 0], sizes = [1, 32], strides = [1, 1]} : vector<2x32xf32> to vector<1x32xf32>
    %93 = vector.extract_strided_slice %71 {offsets = [1, 0], sizes = [1, 32], strides = [1, 1]} : vector<2x32xf32> to vector<1x32xf32>
    %94 = vector.extract_strided_slice %75 {offsets = [1, 0], sizes = [1, 32], strides = [1, 1]} : vector<2x32xf32> to vector<1x32xf32>
    %95 = vector.extract_strided_slice %79 {offsets = [1, 0], sizes = [1, 32], strides = [1, 1]} : vector<2x32xf32> to vector<1x32xf32>
    %96 = tpu.concatenate %80, %81, %82, %83, %84, %85, %86, %87, %88, %89, %90, %91, %92, %93, %94, %95 in 0 : vector<1x32xf32>, vector<1x32xf32>, vector<1x32xf32>, vector<1x32xf32>, vector<1x32xf32>, vector<1x32xf32>, vector<1x32xf32>, vector<1x32xf32>, vector<1x32xf32>, vector<1x32xf32>, vector<1x32xf32>, vector<1x32xf32>, vector<1x32xf32>, vector<1x32xf32>, vector<1x32xf32>, vector<1x32xf32> -> vector<16x32xf32>
    %c0_32 = arith.constant 0 : index
    %c0_33 = arith.constant 0 : index
    %97 = vector.load %arg8[%c0_32, %c0_33] : memref<32x16xf32, #tpu.memory_space<vmem>>, vector<32x16xf32>
    %cst_34 = arith.constant dense<0.000000e+00> : vector<16x16xf32>
    %98 = tpu.matmul %96, %97, %cst_34 {dimension_numbers = #tpu.dot_dimension_numbers<[1], [0], [0], [1], [0, 0, 1, 1], [], []>} : vector<16x32xf32>, vector<32x16xf32>, vector<16x16xf32> -> vector<16x16xf32>
    %c0_35 = arith.constant 0 : index
    %c0_36 = arith.constant 0 : index
    %99 = vector.load %arg9[%c0_35, %c0_36] : memref<1x16xf32, #tpu.memory_space<vmem>>, vector<1x16xf32>
    %100 = vector.broadcast %99 : vector<1x16xf32> to vector<16x16xf32>
    %101 = arith.addf %98, %100 : vector<16x16xf32>
    %c0_37 = arith.constant 0 : index
    %c0_38 = arith.constant 0 : index
    %102 = vector.load %arg10[%c0_37, %c0_38] : memref<16x48xf32, #tpu.memory_space<vmem>>, vector<16x48xf32>
    %cst_39 = arith.constant dense<0.000000e+00> : vector<16x48xf32>
    %103 = tpu.matmul %101, %102, %cst_39 {dimension_numbers = #tpu.dot_dimension_numbers<[1], [0], [0], [1], [0, 0, 1, 1], [], []>} : vector<16x16xf32>, vector<16x48xf32>, vector<16x48xf32> -> vector<16x48xf32>
    %c0_40 = arith.constant 0 : index
    %c0_41 = arith.constant 0 : index
    %104 = vector.load %arg11[%c0_40, %c0_41] : memref<1x48xf32, #tpu.memory_space<vmem>>, vector<1x48xf32>
    %105 = vector.broadcast %104 : vector<1x48xf32> to vector<16x48xf32>
    %106 = arith.addf %103, %105 : vector<16x48xf32>
    %107 = vector.extract_strided_slice %106 {offsets = [0, 0], sizes = [16, 16], strides = [1, 1]} : vector<16x48xf32> to vector<16x16xf32>
    %108 = vector.extract_strided_slice %106 {offsets = [0, 16], sizes = [16, 16], strides = [1, 1]} : vector<16x48xf32> to vector<16x16xf32>
    %109 = vector.extract_strided_slice %106 {offsets = [0, 32], sizes = [16, 16], strides = [1, 1]} : vector<16x48xf32> to vector<16x16xf32>
    %c0_42 = arith.constant 0 : index
    %c0_43 = arith.constant 0 : index
    %110 = vector.load %arg13[%c0_42, %c0_43] : memref<1x8xf32, #tpu.memory_space<vmem>>, vector<1x8xf32>
    %111 = vector.extract_strided_slice %107 {offsets = [0, 0], sizes = [8, 16], strides = [1, 1]} : vector<16x16xf32> to vector<8x16xf32>
    %112 = vector.extract_strided_slice %108 {offsets = [0, 0], sizes = [8, 16], strides = [1, 1]} : vector<16x16xf32> to vector<8x16xf32>
    %113 = vector.extract_strided_slice %109 {offsets = [0, 0], sizes = [8, 16], strides = [1, 1]} : vector<16x16xf32> to vector<8x16xf32>
    %cst_44 = arith.constant dense<0.000000e+00> : vector<16x16xf32>
    %114 = tpu.matmul %111, %112, %cst_44 {dimension_numbers = #tpu.dot_dimension_numbers<[0], [0], [1], [1], [0, 1, 1, 1], [], []>} : vector<8x16xf32>, vector<8x16xf32>, vector<16x16xf32> -> vector<16x16xf32>
    %cst_45 = arith.constant dense<0xFF800000> : vector<16xf32>
    %115 = vector.multi_reduction <maximumf>, %114, %cst_45 [1] : vector<16x16xf32> to vector<16xf32>
    %116 = vector.shape_cast %115 : vector<16xf32> to vector<16x1xf32>
    %117 = vector.broadcast %116 : vector<16x1xf32> to vector<16x16xf32>
    %118 = arith.subf %114, %117 : vector<16x16xf32>
    %119 = math.exp %118 : vector<16x16xf32>
    %cst_46 = arith.constant dense<0.000000e+00> : vector<16xf32>
    %120 = vector.multi_reduction <add>, %119, %cst_46 [1] : vector<16x16xf32> to vector<16xf32>
    %121 = vector.shape_cast %120 : vector<16xf32> to vector<16x1xf32>
    %122 = vector.broadcast %121 : vector<16x1xf32> to vector<16x16xf32>
    %123 = arith.divf %119, %122 : vector<16x16xf32>
    %cst_47 = arith.constant dense<0.000000e+00> : vector<8x16xf32>
    %124 = tpu.matmul %113, %123, %cst_47 {dimension_numbers = #tpu.dot_dimension_numbers<[1], [0], [0], [1], [0, 0, 1, 1], [], []>} : vector<8x16xf32>, vector<16x16xf32>, vector<8x16xf32> -> vector<8x16xf32>
    %125 = vector.extract_strided_slice %124 {offsets = [0, 0], sizes = [1, 16], strides = [1, 1]} : vector<8x16xf32> to vector<1x16xf32>
    %c0_48 = arith.constant 0 : index
    %c0_49 = arith.constant 0 : index
    %c0_50 = arith.constant 0 : index
    %126 = vector.load %arg12[%c0_48, %c0_49, %c0_50] : memref<8x16x8xf32, #tpu.memory_space<vmem>>, vector<1x16x8xf32>
    %127 = vector.shape_cast %126 : vector<1x16x8xf32> to vector<16x8xf32>
    %cst_51 = arith.constant dense<0.000000e+00> : vector<1x8xf32>
    %128 = tpu.matmul %125, %127, %cst_51 {dimension_numbers = #tpu.dot_dimension_numbers<[1], [0], [0], [1], [0, 0, 1, 1], [], []>} : vector<1x16xf32>, vector<16x8xf32>, vector<1x8xf32> -> vector<1x8xf32>
    %129 = arith.addf %110, %128 : vector<1x8xf32>
    %130 = vector.extract_strided_slice %124 {offsets = [1, 0], sizes = [1, 16], strides = [1, 1]} : vector<8x16xf32> to vector<1x16xf32>
    %c1 = arith.constant 1 : index
    %c0_52 = arith.constant 0 : index
    %c0_53 = arith.constant 0 : index
    %131 = vector.load %arg12[%c1, %c0_52, %c0_53] : memref<8x16x8xf32, #tpu.memory_space<vmem>>, vector<1x16x8xf32>
    %132 = vector.shape_cast %131 : vector<1x16x8xf32> to vector<16x8xf32>
    %cst_54 = arith.constant dense<0.000000e+00> : vector<1x8xf32>
    %133 = tpu.matmul %130, %132, %cst_54 {dimension_numbers = #tpu.dot_dimension_numbers<[1], [0], [0], [1], [0, 0, 1, 1], [], []>} : vector<1x16xf32>, vector<16x8xf32>, vector<1x8xf32> -> vector<1x8xf32>
    %134 = arith.addf %129, %133 : vector<1x8xf32>
    %135 = vector.extract_strided_slice %124 {offsets = [2, 0], sizes = [1, 16], strides = [1, 1]} : vector<8x16xf32> to vector<1x16xf32>
    %c2 = arith.constant 2 : index
    %c0_55 = arith.constant 0 : index
    %c0_56 = arith.constant 0 : index
    %136 = vector.load %arg12[%c2, %c0_55, %c0_56] : memref<8x16x8xf32, #tpu.memory_space<vmem>>, vector<1x16x8xf32>
    %137 = vector.shape_cast %136 : vector<1x16x8xf32> to vector<16x8xf32>
    %cst_57 = arith.constant dense<0.000000e+00> : vector<1x8xf32>
    %138 = tpu.matmul %135, %137, %cst_57 {dimension_numbers = #tpu.dot_dimension_numbers<[1], [0], [0], [1], [0, 0, 1, 1], [], []>} : vector<1x16xf32>, vector<16x8xf32>, vector<1x8xf32> -> vector<1x8xf32>
    %139 = arith.addf %134, %138 : vector<1x8xf32>
    %140 = vector.extract_strided_slice %124 {offsets = [3, 0], sizes = [1, 16], strides = [1, 1]} : vector<8x16xf32> to vector<1x16xf32>
    %c3 = arith.constant 3 : index
    %c0_58 = arith.constant 0 : index
    %c0_59 = arith.constant 0 : index
    %141 = vector.load %arg12[%c3, %c0_58, %c0_59] : memref<8x16x8xf32, #tpu.memory_space<vmem>>, vector<1x16x8xf32>
    %142 = vector.shape_cast %141 : vector<1x16x8xf32> to vector<16x8xf32>
    %cst_60 = arith.constant dense<0.000000e+00> : vector<1x8xf32>
    %143 = tpu.matmul %140, %142, %cst_60 {dimension_numbers = #tpu.dot_dimension_numbers<[1], [0], [0], [1], [0, 0, 1, 1], [], []>} : vector<1x16xf32>, vector<16x8xf32>, vector<1x8xf32> -> vector<1x8xf32>
    %144 = arith.addf %139, %143 : vector<1x8xf32>
    %145 = vector.extract_strided_slice %124 {offsets = [4, 0], sizes = [1, 16], strides = [1, 1]} : vector<8x16xf32> to vector<1x16xf32>
    %c4 = arith.constant 4 : index
    %c0_61 = arith.constant 0 : index
    %c0_62 = arith.constant 0 : index
    %146 = vector.load %arg12[%c4, %c0_61, %c0_62] : memref<8x16x8xf32, #tpu.memory_space<vmem>>, vector<1x16x8xf32>
    %147 = vector.shape_cast %146 : vector<1x16x8xf32> to vector<16x8xf32>
    %cst_63 = arith.constant dense<0.000000e+00> : vector<1x8xf32>
    %148 = tpu.matmul %145, %147, %cst_63 {dimension_numbers = #tpu.dot_dimension_numbers<[1], [0], [0], [1], [0, 0, 1, 1], [], []>} : vector<1x16xf32>, vector<16x8xf32>, vector<1x8xf32> -> vector<1x8xf32>
    %149 = arith.addf %144, %148 : vector<1x8xf32>
    %150 = vector.extract_strided_slice %124 {offsets = [5, 0], sizes = [1, 16], strides = [1, 1]} : vector<8x16xf32> to vector<1x16xf32>
    %c5 = arith.constant 5 : index
    %c0_64 = arith.constant 0 : index
    %c0_65 = arith.constant 0 : index
    %151 = vector.load %arg12[%c5, %c0_64, %c0_65] : memref<8x16x8xf32, #tpu.memory_space<vmem>>, vector<1x16x8xf32>
    %152 = vector.shape_cast %151 : vector<1x16x8xf32> to vector<16x8xf32>
    %cst_66 = arith.constant dense<0.000000e+00> : vector<1x8xf32>
    %153 = tpu.matmul %150, %152, %cst_66 {dimension_numbers = #tpu.dot_dimension_numbers<[1], [0], [0], [1], [0, 0, 1, 1], [], []>} : vector<1x16xf32>, vector<16x8xf32>, vector<1x8xf32> -> vector<1x8xf32>
    %154 = arith.addf %149, %153 : vector<1x8xf32>
    %155 = vector.extract_strided_slice %124 {offsets = [6, 0], sizes = [1, 16], strides = [1, 1]} : vector<8x16xf32> to vector<1x16xf32>
    %c6 = arith.constant 6 : index
    %c0_67 = arith.constant 0 : index
    %c0_68 = arith.constant 0 : index
    %156 = vector.load %arg12[%c6, %c0_67, %c0_68] : memref<8x16x8xf32, #tpu.memory_space<vmem>>, vector<1x16x8xf32>
    %157 = vector.shape_cast %156 : vector<1x16x8xf32> to vector<16x8xf32>
    %cst_69 = arith.constant dense<0.000000e+00> : vector<1x8xf32>
    %158 = tpu.matmul %155, %157, %cst_69 {dimension_numbers = #tpu.dot_dimension_numbers<[1], [0], [0], [1], [0, 0, 1, 1], [], []>} : vector<1x16xf32>, vector<16x8xf32>, vector<1x8xf32> -> vector<1x8xf32>
    %159 = arith.addf %154, %158 : vector<1x8xf32>
    %160 = vector.extract_strided_slice %124 {offsets = [7, 0], sizes = [1, 16], strides = [1, 1]} : vector<8x16xf32> to vector<1x16xf32>
    %c7 = arith.constant 7 : index
    %c0_70 = arith.constant 0 : index
    %c0_71 = arith.constant 0 : index
    %161 = vector.load %arg12[%c7, %c0_70, %c0_71] : memref<8x16x8xf32, #tpu.memory_space<vmem>>, vector<1x16x8xf32>
    %162 = vector.shape_cast %161 : vector<1x16x8xf32> to vector<16x8xf32>
    %cst_72 = arith.constant dense<0.000000e+00> : vector<1x8xf32>
    %163 = tpu.matmul %160, %162, %cst_72 {dimension_numbers = #tpu.dot_dimension_numbers<[1], [0], [0], [1], [0, 0, 1, 1], [], []>} : vector<1x16xf32>, vector<16x8xf32>, vector<1x8xf32> -> vector<1x8xf32>
    %164 = arith.addf %159, %163 : vector<1x8xf32>
    %165 = vector.extract_strided_slice %107 {offsets = [8, 0], sizes = [8, 16], strides = [1, 1]} : vector<16x16xf32> to vector<8x16xf32>
    %166 = vector.extract_strided_slice %108 {offsets = [8, 0], sizes = [8, 16], strides = [1, 1]} : vector<16x16xf32> to vector<8x16xf32>
    %167 = vector.extract_strided_slice %109 {offsets = [8, 0], sizes = [8, 16], strides = [1, 1]} : vector<16x16xf32> to vector<8x16xf32>
    %cst_73 = arith.constant dense<0.000000e+00> : vector<16x16xf32>
    %168 = tpu.matmul %165, %166, %cst_73 {dimension_numbers = #tpu.dot_dimension_numbers<[0], [0], [1], [1], [0, 1, 1, 1], [], []>} : vector<8x16xf32>, vector<8x16xf32>, vector<16x16xf32> -> vector<16x16xf32>
    %cst_74 = arith.constant dense<0xFF800000> : vector<16xf32>
    %169 = vector.multi_reduction <maximumf>, %168, %cst_74 [1] : vector<16x16xf32> to vector<16xf32>
    %170 = vector.shape_cast %169 : vector<16xf32> to vector<16x1xf32>
    %171 = vector.broadcast %170 : vector<16x1xf32> to vector<16x16xf32>
    %172 = arith.subf %168, %171 : vector<16x16xf32>
    %173 = math.exp %172 : vector<16x16xf32>
    %cst_75 = arith.constant dense<0.000000e+00> : vector<16xf32>
    %174 = vector.multi_reduction <add>, %173, %cst_75 [1] : vector<16x16xf32> to vector<16xf32>
    %175 = vector.shape_cast %174 : vector<16xf32> to vector<16x1xf32>
    %176 = vector.broadcast %175 : vector<16x1xf32> to vector<16x16xf32>
    %177 = arith.divf %173, %176 : vector<16x16xf32>
    %cst_76 = arith.constant dense<0.000000e+00> : vector<8x16xf32>
    %178 = tpu.matmul %167, %177, %cst_76 {dimension_numbers = #tpu.dot_dimension_numbers<[1], [0], [0], [1], [0, 0, 1, 1], [], []>} : vector<8x16xf32>, vector<16x16xf32>, vector<8x16xf32> -> vector<8x16xf32>
    %179 = vector.extract_strided_slice %178 {offsets = [0, 0], sizes = [1, 16], strides = [1, 1]} : vector<8x16xf32> to vector<1x16xf32>
    %c0_77 = arith.constant 0 : index
    %c0_78 = arith.constant 0 : index
    %c0_79 = arith.constant 0 : index
    %180 = vector.load %arg12[%c0_77, %c0_78, %c0_79] : memref<8x16x8xf32, #tpu.memory_space<vmem>>, vector<1x16x8xf32>
    %181 = vector.shape_cast %180 : vector<1x16x8xf32> to vector<16x8xf32>
    %cst_80 = arith.constant dense<0.000000e+00> : vector<1x8xf32>
    %182 = tpu.matmul %179, %181, %cst_80 {dimension_numbers = #tpu.dot_dimension_numbers<[1], [0], [0], [1], [0, 0, 1, 1], [], []>} : vector<1x16xf32>, vector<16x8xf32>, vector<1x8xf32> -> vector<1x8xf32>
    %183 = arith.addf %110, %182 : vector<1x8xf32>
    %184 = vector.extract_strided_slice %178 {offsets = [1, 0], sizes = [1, 16], strides = [1, 1]} : vector<8x16xf32> to vector<1x16xf32>
    %c1_81 = arith.constant 1 : index
    %c0_82 = arith.constant 0 : index
    %c0_83 = arith.constant 0 : index
    %185 = vector.load %arg12[%c1_81, %c0_82, %c0_83] : memref<8x16x8xf32, #tpu.memory_space<vmem>>, vector<1x16x8xf32>
    %186 = vector.shape_cast %185 : vector<1x16x8xf32> to vector<16x8xf32>
    %cst_84 = arith.constant dense<0.000000e+00> : vector<1x8xf32>
    %187 = tpu.matmul %184, %186, %cst_84 {dimension_numbers = #tpu.dot_dimension_numbers<[1], [0], [0], [1], [0, 0, 1, 1], [], []>} : vector<1x16xf32>, vector<16x8xf32>, vector<1x8xf32> -> vector<1x8xf32>
    %188 = arith.addf %183, %187 : vector<1x8xf32>
    %189 = vector.extract_strided_slice %178 {offsets = [2, 0], sizes = [1, 16], strides = [1, 1]} : vector<8x16xf32> to vector<1x16xf32>
    %c2_85 = arith.constant 2 : index
    %c0_86 = arith.constant 0 : index
    %c0_87 = arith.constant 0 : index
    %190 = vector.load %arg12[%c2_85, %c0_86, %c0_87] : memref<8x16x8xf32, #tpu.memory_space<vmem>>, vector<1x16x8xf32>
    %191 = vector.shape_cast %190 : vector<1x16x8xf32> to vector<16x8xf32>
    %cst_88 = arith.constant dense<0.000000e+00> : vector<1x8xf32>
    %192 = tpu.matmul %189, %191, %cst_88 {dimension_numbers = #tpu.dot_dimension_numbers<[1], [0], [0], [1], [0, 0, 1, 1], [], []>} : vector<1x16xf32>, vector<16x8xf32>, vector<1x8xf32> -> vector<1x8xf32>
    %193 = arith.addf %188, %192 : vector<1x8xf32>
    %194 = vector.extract_strided_slice %178 {offsets = [3, 0], sizes = [1, 16], strides = [1, 1]} : vector<8x16xf32> to vector<1x16xf32>
    %c3_89 = arith.constant 3 : index
    %c0_90 = arith.constant 0 : index
    %c0_91 = arith.constant 0 : index
    %195 = vector.load %arg12[%c3_89, %c0_90, %c0_91] : memref<8x16x8xf32, #tpu.memory_space<vmem>>, vector<1x16x8xf32>
    %196 = vector.shape_cast %195 : vector<1x16x8xf32> to vector<16x8xf32>
    %cst_92 = arith.constant dense<0.000000e+00> : vector<1x8xf32>
    %197 = tpu.matmul %194, %196, %cst_92 {dimension_numbers = #tpu.dot_dimension_numbers<[1], [0], [0], [1], [0, 0, 1, 1], [], []>} : vector<1x16xf32>, vector<16x8xf32>, vector<1x8xf32> -> vector<1x8xf32>
    %198 = arith.addf %193, %197 : vector<1x8xf32>
    %199 = vector.extract_strided_slice %178 {offsets = [4, 0], sizes = [1, 16], strides = [1, 1]} : vector<8x16xf32> to vector<1x16xf32>
    %c4_93 = arith.constant 4 : index
    %c0_94 = arith.constant 0 : index
    %c0_95 = arith.constant 0 : index
    %200 = vector.load %arg12[%c4_93, %c0_94, %c0_95] : memref<8x16x8xf32, #tpu.memory_space<vmem>>, vector<1x16x8xf32>
    %201 = vector.shape_cast %200 : vector<1x16x8xf32> to vector<16x8xf32>
    %cst_96 = arith.constant dense<0.000000e+00> : vector<1x8xf32>
    %202 = tpu.matmul %199, %201, %cst_96 {dimension_numbers = #tpu.dot_dimension_numbers<[1], [0], [0], [1], [0, 0, 1, 1], [], []>} : vector<1x16xf32>, vector<16x8xf32>, vector<1x8xf32> -> vector<1x8xf32>
    %203 = arith.addf %198, %202 : vector<1x8xf32>
    %204 = vector.extract_strided_slice %178 {offsets = [5, 0], sizes = [1, 16], strides = [1, 1]} : vector<8x16xf32> to vector<1x16xf32>
    %c5_97 = arith.constant 5 : index
    %c0_98 = arith.constant 0 : index
    %c0_99 = arith.constant 0 : index
    %205 = vector.load %arg12[%c5_97, %c0_98, %c0_99] : memref<8x16x8xf32, #tpu.memory_space<vmem>>, vector<1x16x8xf32>
    %206 = vector.shape_cast %205 : vector<1x16x8xf32> to vector<16x8xf32>
    %cst_100 = arith.constant dense<0.000000e+00> : vector<1x8xf32>
    %207 = tpu.matmul %204, %206, %cst_100 {dimension_numbers = #tpu.dot_dimension_numbers<[1], [0], [0], [1], [0, 0, 1, 1], [], []>} : vector<1x16xf32>, vector<16x8xf32>, vector<1x8xf32> -> vector<1x8xf32>
    %208 = arith.addf %203, %207 : vector<1x8xf32>
    %209 = vector.extract_strided_slice %178 {offsets = [6, 0], sizes = [1, 16], strides = [1, 1]} : vector<8x16xf32> to vector<1x16xf32>
    %c6_101 = arith.constant 6 : index
    %c0_102 = arith.constant 0 : index
    %c0_103 = arith.constant 0 : index
    %210 = vector.load %arg12[%c6_101, %c0_102, %c0_103] : memref<8x16x8xf32, #tpu.memory_space<vmem>>, vector<1x16x8xf32>
    %211 = vector.shape_cast %210 : vector<1x16x8xf32> to vector<16x8xf32>
    %cst_104 = arith.constant dense<0.000000e+00> : vector<1x8xf32>
    %212 = tpu.matmul %209, %211, %cst_104 {dimension_numbers = #tpu.dot_dimension_numbers<[1], [0], [0], [1], [0, 0, 1, 1], [], []>} : vector<1x16xf32>, vector<16x8xf32>, vector<1x8xf32> -> vector<1x8xf32>
    %213 = arith.addf %208, %212 : vector<1x8xf32>
    %214 = vector.extract_strided_slice %178 {offsets = [7, 0], sizes = [1, 16], strides = [1, 1]} : vector<8x16xf32> to vector<1x16xf32>
    %c7_105 = arith.constant 7 : index
    %c0_106 = arith.constant 0 : index
    %c0_107 = arith.constant 0 : index
    %215 = vector.load %arg12[%c7_105, %c0_106, %c0_107] : memref<8x16x8xf32, #tpu.memory_space<vmem>>, vector<1x16x8xf32>
    %216 = vector.shape_cast %215 : vector<1x16x8xf32> to vector<16x8xf32>
    %cst_108 = arith.constant dense<0.000000e+00> : vector<1x8xf32>
    %217 = tpu.matmul %214, %216, %cst_108 {dimension_numbers = #tpu.dot_dimension_numbers<[1], [0], [0], [1], [0, 0, 1, 1], [], []>} : vector<1x16xf32>, vector<16x8xf32>, vector<1x8xf32> -> vector<1x8xf32>
    %218 = arith.addf %213, %217 : vector<1x8xf32>
    %219 = tpu.concatenate %164, %218 in 0 : vector<1x8xf32>, vector<1x8xf32> -> vector<2x8xf32>
    %c0_109 = arith.constant 0 : index
    %c0_110 = arith.constant 0 : index
    %220 = vector.load %arg14[%c0_109, %c0_110] : memref<2x8xf32, #tpu.memory_space<vmem>>, vector<2x8xf32>
    tpu.vector_store %arg14[%c0_109, %c0_110], %219 {strides = array<i32>} : memref<2x8xf32, #tpu.memory_space<vmem>>, vector<2x8xf32>,
    %221 = vector.shape_cast %123 : vector<16x16xf32> to vector<1x16x16xf32>
    %222 = vector.shape_cast %177 : vector<16x16xf32> to vector<1x16x16xf32>
    %223 = tpu.concatenate %221, %222 in 0 : vector<1x16x16xf32>, vector<1x16x16xf32> -> vector<2x16x16xf32>
    %c0_111 = arith.constant 0 : index
    %c0_112 = arith.constant 0 : index
    %c0_113 = arith.constant 0 : index
    %224 = vector.load %arg15[%c0_111, %c0_112, %c0_113] : memref<2x16x16xf32, #tpu.memory_space<vmem>>, vector<2x16x16xf32>
    tpu.vector_store %arg15[%c0_111, %c0_112, %c0_113], %223 {strides = array<i32>} : memref<2x16x16xf32, #tpu.memory_space<vmem>>, vector<2x16x16xf32>,
    return
  }
  func.func @transform_0(%arg0: i32) -> (i32, i32) {
    %c0_i32 = arith.constant 0 : i32
    %c0_i32_0 = arith.constant 0 : i32
    %c0_i32_1 = arith.constant 0 : i32
    return %c0_i32, %c0_i32_0 : i32, i32
  }
  func.func @transform_1(%arg0: i32) -> (i32, i32) {
    %c0_i32 = arith.constant 0 : i32
    %c0_i32_0 = arith.constant 0 : i32
    %c0_i32_1 = arith.constant 0 : i32
    return %c0_i32, %c0_i32_0 : i32, i32
  }
  func.func @transform_2(%arg0: i32) -> (i32, i32) {
    %c0_i32 = arith.constant 0 : i32
    %c0_i32_0 = arith.constant 0 : i32
    %c0_i32_1 = arith.constant 0 : i32
    return %c0_i32, %c0_i32_0 : i32, i32
  }
  func.func @transform_3(%arg0: i32) -> (i32, i32) {
    %c0_i32 = arith.constant 0 : i32
    %c0_i32_0 = arith.constant 0 : i32
    %c0_i32_1 = arith.constant 0 : i32
    return %c0_i32, %c0_i32_0 : i32, i32
  }
  func.func @transform_4(%arg0: i32) -> (i32, i32) {
    %c0_i32 = arith.constant 0 : i32
    %c0_i32_0 = arith.constant 0 : i32
    %c0_i32_1 = arith.constant 0 : i32
    return %c0_i32, %c0_i32_0 : i32, i32
  }
  func.func @transform_5(%arg0: i32) -> (i32, i32) {
    %c0_i32 = arith.constant 0 : i32
    %c0_i32_0 = arith.constant 0 : i32
    %c0_i32_1 = arith.constant 0 : i32
    return %c0_i32, %c0_i32_0 : i32, i32
  }
  func.func @transform_6(%arg0: i32) -> (i32, i32) {
    %c0_i32 = arith.constant 0 : i32
    %c0_i32_0 = arith.constant 0 : i32
    %c0_i32_1 = arith.constant 0 : i32
    return %c0_i32, %c0_i32_0 : i32, i32
  }
  func.func @transform_7(%arg0: i32) -> (i32, i32) {
    %c0_i32 = arith.constant 0 : i32
    %c0_i32_0 = arith.constant 0 : i32
    %c0_i32_1 = arith.constant 0 : i32
    return %c0_i32, %c0_i32_0 : i32, i32
  }
  func.func @transform_8(%arg0: i32) -> (i32, i32) {
    %c0_i32 = arith.constant 0 : i32
    %c0_i32_0 = arith.constant 0 : i32
    %c0_i32_1 = arith.constant 0 : i32
    return %c0_i32, %c0_i32_0 : i32, i32
  }
  func.func @transform_9(%arg0: i32) -> (i32, i32) {
    %c0_i32 = arith.constant 0 : i32
    %c0_i32_0 = arith.constant 0 : i32
    %c0_i32_1 = arith.constant 0 : i32
    return %c0_i32, %c0_i32_0 : i32, i32
  }
  func.func @transform_10(%arg0: i32) -> (i32, i32) {
    %c0_i32 = arith.constant 0 : i32
    %c0_i32_0 = arith.constant 0 : i32
    %c0_i32_1 = arith.constant 0 : i32
    return %c0_i32, %c0_i32_0 : i32, i32
  }
  func.func @transform_11(%arg0: i32) -> (i32, i32, i32) {
    %c0_i32 = arith.constant 0 : i32
    %c0_i32_0 = arith.constant 0 : i32
    %c0_i32_1 = arith.constant 0 : i32
    %c0_i32_2 = arith.constant 0 : i32
    return %c0_i32, %c0_i32_0, %c0_i32_1 : i32, i32, i32
  }
  func.func @transform_12(%arg0: i32) -> (i32, i32) {
    %c0_i32 = arith.constant 0 : i32
    %c0_i32_0 = arith.constant 0 : i32
    %c0_i32_1 = arith.constant 0 : i32
    return %c0_i32, %c0_i32_0 : i32, i32
  }
  func.func @transform_13(%arg0: i32) -> (i32, i32) {
    %c0_i32 = arith.constant 0 : i32
    %c0_i32_0 = arith.constant 0 : i32
    %c0_i32_1 = arith.constant 0 : i32
    return %c0_i32, %c0_i32_0 : i32, i32
  }
  func.func @transform_14(%arg0: i32) -> (i32, i32, i32) {
    %c0_i32 = arith.constant 0 : i32
    %c0_i32_0 = arith.constant 0 : i32
    %c0_i32_1 = arith.constant 0 : i32
    %c0_i32_2 = arith.constant 0 : i32
    return %c0_i32, %c0_i32_0, %c0_i32_1 : i32, i32, i32
  }
}

</mosaic_0001>

<bundles_post_ra>
// kernel: tpu_custom_call.1
= control target key start
LH: loop header
LB: loop body
LE: loop exit
PB: predicated region body
PF: predicated region fallthrough
CT: control target
= control target key end

     0   :  { %20 = vsyncpa [#allocation3], 0  ;;  %v4070_v3 = vmov 0.0   ;;  %vm59_vm0 = vcmask 130048   ;;  %s4701_s0 = inlined_call_operand.vmem [shape: f32[16,16], index: 0, kind: input, shape index: {}]   ;;  %s4702_s1 = inlined_call_operand.vmem [shape: f32[16,32], index: 1, kind: input, shape index: {}]   ;;  %s4703_s2 = inlined_call_operand.vmem [shape: f32[32,32], index: 2, kind: input, shape index: {}]   ;;  %s4704_s3 = inlined_call_operand.vmem [shape: f32[1,32], index: 3, kind: input, shape index: {}]   ;;  %s4705_s4 = inlined_call_operand.vmem [shape: f32[32,32], index: 4, kind: input, shape index: {}]   ;;  %s4706_s5 = inlined_call_operand.vmem [shape: f32[32,32], index: 5, kind: input, shape index: {}]   ;;  %s4707_s6 = inlined_call_operand.vmem [shape: f32[1,32], index: 6, kind: input, shape index: {}]   ;;  %s4708_s7 = inlined_call_operand.vmem [shape: f32[32,16], index: 7, kind: input, shape index: {}]   ;;  %s4709_s8 = inlined_call_operand.vmem [shape: f32[1,16], index: 8, kind: input, shape index: {}]   ;;  %s4710_s9 = inlined_call_operand.vmem [shape: f32[16,48], index: 9, kind: input, shape index: {}]   ;;  %s4711_s10 = inlined_call_operand.vmem [shape: f32[1,48], index: 10, kind: input, shape index: {}]   ;;  %s4712_s11 = inlined_call_operand.vmem [shape: f32[8,16,8], index: 11, kind: input, shape index: {}]   ;;  %s4713_s12 = inlined_call_operand.vmem [shape: f32[1,8], index: 12, kind: input, shape index: {}]   ;;  %s4714_s13 = inlined_call_operand.hbm [shape: f32[2,8], index: 13, kind: output, shape index: {0}]   ;;  %s4715_s14 = inlined_call_operand.hbm [shape: f32[2,16,16], index: 14, kind: output, shape index: {1}]  }
   0x1   :  { %v51_v0 = vld [vmem:[%s4702_s1 + $0x8] sm:$0xff]  ;;  %v4159_v1 = vld [vmem:[%s4703_s2 + $0x18] sm:$0xff]  ;;  %v50_v2 = vld [vmem:[%s4702_s1] sm:$0xff]  ;;  %3629 = vmatprep.subr.mxu1 %v4070_v3 }
   0x2   :  { %3622 = vmatprep.subr.mxu0 %v51_v0  ;;  %v48_v4 = vld [vmem:[%s4701_s0] sm:$0xff]  ;;  %3630 = vmatpush3.msra.mxu1 %v4159_v1  ;;  %v4172_v5 = vld [vmem:[%s4703_s2 + $0x10] sm:$0xff]  ;;  %v49_v6 = vld [vmem:[%s4701_s0 + $0x8] sm:$0xff] }
   0x3   :  { %3623 = vmatpush3.msra.mxu0 %v51_v0 }
   0x4   :  { %21 = vsyncpa [#allocation5], 0  ;;  %3624 = vmatprep.subr.mxu0 %v50_v2  ;;  %3631 = vmatprep.subr.mxu1 %v4070_v3  ;;  %v4182_v7 = vld [vmem:[%s4703_s2 + $0x8] sm:$0xff]  ;;  %v4190_v8 = vld [vmem:[%s4703_s2] sm:$0xff]  ;;  %vm4071_vm1 = vmmov 0   ;;  %vm145_vm2 = vcmask 261120  }
   0x5   :  { %3625 = vmatpush3.msra.mxu0 %v50_v2  ;;  %3626 = vmatprep.mubr.msk.f32.mxu0 %vm59_vm0, %v48_v4  ;;  %v3400_v9 = vld [vmem:[%s4704_s3] ss:$0 sm:$0xff]  ;;  %vm769_vm3 = vcmask 1041408   ;;  %vm771_vm4 = vcmask 1043456   ;;  %vm773_vm5 = vcmask 1045504   ;;  %v781_v57 = vld [vmem:[%s4705_s4 + $0x18] sm:$0xff] }
   0x6   :  { %3632 = vmatpush3.msra.mxu1 %v4172_v5  ;;  %3627 = vmatmul.mubr.msk.f32.vlgmr.msra.gmra.mxu0 %vm59_vm0, %v49_v6  ;;  %v780_v58 = vld [vmem:[%s4705_s4 + $0x10] sm:$0xff]  ;;  %v4301_v59 = vld [vmem:[%s4706_s5 + $0x18] sm:$0xff]  ;;  %v779_v61 = vld [vmem:[%s4705_s4 + $0x8] sm:$0xff]  ;;  %vm1522_vm6 = vcmask 1040384   ;;  %vm1525_vm7 = vcmask 1042432   ;;  %vm1528_vm8 = vcmask 1044480  }
   0x7   :  { %3633 = vmatprep.subr.mxu1 %v4070_v3  ;;  %3637 = vmatprep.mubr.msk.f32.mxu1 %vm4071_vm1, %v4070_v3  ;;  %v4307_v60 = vld [vmem:[%s4706_s5 + $0x10] sm:$0xff]  ;;  %v4316_v62 = vld [vmem:[%s4706_s5 + $0x8] sm:$0xff]  ;;  %v778_v63 = vld [vmem:[%s4705_s4] sm:$0xff]  ;;  %vm1531_vm9 = vcmask 1046528   ;;  %s4072_s20 = smov 112   ;;  %vm1759_vm10 = vcmask 64512  }
   0x8   :  { %3634 = vmatpush3.msra.mxu1 %v4182_v7  ;;  %3640 = vmatprep.subr.mxu0 %v4070_v3  ;;  %v4329_v0 = vld [vmem:[%s4706_s5] sm:$0xff] }
   0x9   :  { %3635 = vmatprep.subr.mxu1 %v4070_v3  ;;  %3641 = vmatpush3.msra.mxu0 %v4159_v1 }
   0xa   :  { %3636 = vmatpush3.msra.mxu1 %v4190_v8  ;;  %3642 = vmatprep.subr.mxu0 %v4070_v3 }
   0xb   :  { %3638 = vmatmul.mubr.f32.vlgmr.msra.gmra.mxu1 %v4070_v3  ;;  %3643 = vmatpush3.msra.mxu0 %v4172_v5 }
   0xc   :  { %3644 = vmatprep.subr.mxu0 %v4070_v3  ;;  %3648 = vmatprep.mubr.msk.f32.mxu0 %vm4071_vm1, %v4070_v3 }
   0xd   :  { %3645 = vmatpush3.msra.mxu0 %v4182_v7  ;;  %3651 = vmatprep.subr.mxu1 %v4070_v3 }
   0xe   :  { %3646 = vmatprep.subr.mxu0 %v4070_v3  ;;  %3652 = vmatpush3.msra.mxu1 %v4159_v1 }
   0xf   :  { %3647 = vmatpush3.msra.mxu0 %v4190_v8  ;;  %3653 = vmatprep.subr.mxu1 %v4070_v3 }
  0x10   :  { %3654 = vmatpush3.msra.mxu1 %v4172_v5  ;;  %3659 = vmatprep.mubr.msk.f32.mxu1 %vm4071_vm1, %v4070_v3 }
  0x11   :  { %3655 = vmatprep.subr.mxu1 %v4070_v3  ;;  %3662 = vmatprep.subr.mxu0 %v4070_v3 }
  0x12   :  { %3656 = vmatpush3.msra.mxu1 %v4182_v7 }
  0x13   :  { %3657 = vmatprep.subr.mxu1 %v4070_v3 }
  0x14   :  { %3658 = vmatpush3.msra.mxu1 %v4190_v8 }
  0x15   :  { %3673 = vmatprep.subr.mxu1 %v4070_v3 }
  0xc6   :  { %v3628_v10 = vpop.f32.mrf.mxu0 }
  0xc7   :  { %v4223_v11 = vadd.f32 %v3628_v10, %v3400_v9  ;;  %v3410_v10 = vld [vmem:[%s4707_s6] ss:$0 sm:$0xff] }
  0xc8   :  { %v132_v12 = vpop.f32.mrf.mxu0 }
  0xc9   :  { %v133_v13 = vadd.f32 %v3400_v9, %v132_v12 }
  0xcb   :  { %v215_v14 = vpop.f32.mrf.mxu1 }
  0xcc   :  { %v219_v15 = vadd.f32 %v215_v14, %v133_v13 }
  0xcd   :  { %v3639_v16 = vpop.f32.mrf.mxu1 }
  0xce   :  { %3978 = vtanh.f32 %v219_v15 }
  0xdb   :  { %v3979_v17 = vpop.eup %3978 }
  0xdc   :  { %3649 = vmatmul.mubr.msk.f32.vlgmr.msra.gmra.mxu0 %vm145_vm2, %v3979_v17 }
  0xdd   :  { %3663 = vmatpush3.msra.mxu0 %v4159_v1  ;;  %3670 = vmatprep.mubr.msk.f32.mxu0 %vm4071_vm1, %v4070_v3 }
  0xde   :  { %3664 = vmatprep.subr.mxu0 %v4070_v3 }
  0xdf   :  { %3665 = vmatpush3.msra.mxu0 %v4172_v5 }
  0xe0   :  { %3666 = vmatprep.subr.mxu0 %v4070_v3 }
  0xe1   :  { %3667 = vmatpush3.msra.mxu0 %v4182_v7 }
  0xe2   :  { %3668 = vmatprep.subr.mxu0 %v4070_v3 }
  0xe3   :  { %3669 = vmatpush3.msra.mxu0 %v4190_v8 }
  0xe4   :  { %3684 = vmatprep.subr.mxu0 %v4070_v3 }
 0x19c   :  { %v290_v18 = vpop.f32.mrf.mxu0 }
 0x19d   :  { %v295_v19 = vrot.slane %v290_v18, 6 }
 0x19e   :  { %v3650_v20 = vpop.f32.mrf.mxu0 }
 0x19f   :  { %v297_v21 = vadd.f32 %v295_v19, %v133_v13 }
 0x1a1   :  { %3980 = vtanh.f32 %v297_v21 }
 0x1ae   :  { %v3981_v22 = vpop.eup %3980 }
 0x1af   :  { %v300_v23 = vrot.slane %v3981_v22, 2  ;;  %v770_v29 = vsel %vm769_vm3, %v3979_v17, %v3981_v22 }
 0x1b1   :  { %3660 = vmatmul.mubr.msk.f32.vlgmr.msra.gmra.mxu1 %vm145_vm2, %v300_v23 }
 0x1b2   :  { %3674 = vmatpush3.msra.mxu1 %v4159_v1  ;;  %3681 = vmatprep.mubr.msk.f32.mxu1 %vm4071_vm1, %v4070_v3 }
 0x1b3   :  { %3675 = vmatprep.subr.mxu1 %v4070_v3 }
 0x1b4   :  { %3676 = vmatpush3.msra.mxu1 %v4172_v5 }
 0x1b5   :  { %3677 = vmatprep.subr.mxu1 %v4070_v3 }
 0x1b6   :  { %3678 = vmatpush3.msra.mxu1 %v4182_v7 }
 0x1b7   :  { %3679 = vmatprep.subr.mxu1 %v4070_v3 }
 0x1b8   :  { %3680 = vmatpush3.msra.mxu1 %v4190_v8 }
 0x1b9   :  { %3695 = vmatprep.subr.mxu1 %v4070_v3 }
 0x271   :  { %v369_v24 = vpop.f32.mrf.mxu1 }
 0x272   :  { %v374_v25 = vrot.slane %v369_v24, 4 }
 0x273   :  { %v3661_v26 = vpop.f32.mrf.mxu1 }
 0x274   :  { %v376_v27 = vadd.f32 %v374_v25, %v133_v13 }
 0x276   :  { %3982 = vtanh.f32 %v376_v27 }
 0x283   :  { %v3983_v28 = vpop.eup %3982 }
 0x284   :  { %v379_v30 = vrot.slane %v3983_v28, 4  ;;  %v772_v31 = vsel %vm771_vm4, %v770_v29, %v3983_v28 }
 0x286   :  { %3671 = vmatmul.mubr.msk.f32.vlgmr.msra.gmra.mxu0 %vm145_vm2, %v379_v30 }
 0x287   :  { %3685 = vmatpush3.msra.mxu0 %v4159_v1  ;;  %3692 = vmatprep.mubr.msk.f32.mxu0 %vm4071_vm1, %v4070_v3 }
 0x288   :  { %3686 = vmatprep.subr.mxu0 %v4070_v3 }
 0x289   :  { %3687 = vmatpush3.msra.mxu0 %v4172_v5 }
 0x28a   :  { %3688 = vmatprep.subr.mxu0 %v4070_v3 }
 0x28b   :  { %3689 = vmatpush3.msra.mxu0 %v4182_v7 }
 0x28c   :  { %3690 = vmatprep.subr.mxu0 %v4070_v3 }
 0x28d   :  { %3691 = vmatpush3.msra.mxu0 %v4190_v8 }
 0x28e   :  { %3706 = vmatprep.subr.mxu0 %v4070_v3 }
 0x346   :  { %v448_v32 = vpop.f32.mrf.mxu0 }
 0x347   :  { %v453_v33 = vrot.slane %v448_v32, 2 }
 0x348   :  { %v3672_v34 = vpop.f32.mrf.mxu0 }
 0x349   :  { %v455_v35 = vadd.f32 %v453_v33, %v133_v13 }
 0x34b   :  { %3984 = vtanh.f32 %v455_v35 }
 0x358   :  { %v3985_v36 = vpop.eup %3984 }
 0x359   :  { %v458_v37 = vrot.slane %v3985_v36, 6  ;;  %v774_v38 = vsel %vm773_vm5, %v772_v31, %v3985_v36 }
 0x35b   :  { %3682 = vmatmul.mubr.msk.f32.vlgmr.msra.gmra.mxu1 %vm145_vm2, %v458_v37 }
 0x35c   :  { %3696 = vmatpush3.msra.mxu1 %v4159_v1  ;;  %3703 = vmatprep.mubr.msk.f32.mxu1 %vm4071_vm1, %v4070_v3 }
 0x35d   :  { %3697 = vmatprep.subr.mxu1 %v4070_v3 }
 0x35e   :  { %3698 = vmatpush3.msra.mxu1 %v4172_v5 }
 0x35f   :  { %3699 = vmatprep.subr.mxu1 %v4070_v3 }
 0x360   :  { %3700 = vmatpush3.msra.mxu1 %v4182_v7 }
 0x361   :  { %3701 = vmatprep.subr.mxu1 %v4070_v3 }
 0x362   :  { %3702 = vmatpush3.msra.mxu1 %v4190_v8 }
 0x363   :  { %3717 = vmatprep.subr.mxu1 %v781_v57 }
 0x41b   :  { %v527_v39 = vpop.f32.mrf.mxu1 }
 0x41c   :  { %v531_v40 = vadd.f32 %v527_v39, %v4223_v11 }
 0x41d   :  { %v3683_v41 = vpop.f32.mrf.mxu1 }
 0x41e   :  { %3986 = vtanh.f32 %v531_v40 }
 0x42b   :  { %v3987_v42 = vpop.eup %3986 }
 0x42c   :  { %3693 = vmatmul.mubr.msk.f32.vlgmr.msra.gmra.mxu0 %vm145_vm2, %v3987_v42 }
 0x42d   :  { %3707 = vmatpush3.msra.mxu0 %v4159_v1  ;;  %3714 = vmatprep.mubr.msk.f32.mxu0 %vm4071_vm1, %v4070_v3 }
 0x42e   :  { %3708 = vmatprep.subr.mxu0 %v4070_v3 }
 0x42f   :  { %3709 = vmatpush3.msra.mxu0 %v4172_v5 }
 0x430   :  { %3710 = vmatprep.subr.mxu0 %v4070_v3 }
 0x431   :  { %3711 = vmatpush3.msra.mxu0 %v4182_v7 }
 0x432   :  { %3712 = vmatprep.subr.mxu0 %v4070_v3 }
 0x433   :  { %3713 = vmatpush3.msra.mxu0 %v4190_v8 }
 0x434   :  { %3728 = vmatprep.subr.mxu0 %v4070_v3 }
 0x4ec   :  { %v602_v43 = vpop.f32.mrf.mxu0 }
 0x4ed   :  { %v607_v44 = vrot.slane %v602_v43, 6 }
 0x4ee   :  { %v3694_v45 = vpop.f32.mrf.mxu0 }
 0x4ef   :  { %v609_v46 = vadd.f32 %v607_v44, %v4223_v11 }
 0x4f1   :  { %3988 = vtanh.f32 %v609_v46 }
 0x4fe   :  { %v3989_v47 = vpop.eup %3988 }
 0x4ff   :  { %v612_v48 = vrot.slane %v3989_v47, 2  ;;  %v775_v54 = vsel %vm769_vm3, %v3987_v42, %v3989_v47 }
 0x501   :  { %3704 = vmatmul.mubr.msk.f32.vlgmr.msra.gmra.mxu1 %vm145_vm2, %v612_v48 }
 0x502   :  { %3725 = vmatprep.mubr.msk.f32.mxu1 %vm145_vm2, %v774_v38  ;;  %3718 = vmatpush3.msra.mxu1 %v781_v57 }
 0x503   :  { %3719 = vmatprep.subr.mxu1 %v780_v58 }
 0x504   :  { %3720 = vmatpush3.msra.mxu1 %v780_v58 }
 0x505   :  { %3721 = vmatprep.subr.mxu1 %v779_v61 }
 0x506   :  { %3722 = vmatpush3.msra.mxu1 %v779_v61 }
 0x507   :  { %3723 = vmatprep.subr.mxu1 %v778_v63 }
 0x508   :  { %3724 = vmatpush3.msra.mxu1 %v778_v63 }
 0x509   :  { %3739 = vmatprep.subr.mxu1 %v4070_v3 }
 0x5c1   :  { %v681_v49 = vpop.f32.mrf.mxu1 }
 0x5c2   :  { %v686_v50 = vrot.slane %v681_v49, 4 }
 0x5c3   :  { %v3705_v51 = vpop.f32.mrf.mxu1 }
 0x5c4   :  { %v688_v52 = vadd.f32 %v686_v50, %v4223_v11 }
 0x5c6   :  { %3990 = vtanh.f32 %v688_v52 }
 0x5d3   :  { %v3991_v53 = vpop.eup %3990 }
 0x5d4   :  { %v691_v55 = vrot.slane %v3991_v53, 4  ;;  %v776_v56 = vsel %vm771_vm4, %v775_v54, %v3991_v53 }
 0x5d6   :  { %3715 = vmatmul.mubr.msk.f32.vlgmr.msra.gmra.mxu0 %vm145_vm2, %v691_v55 }
 0x5d7   :  { %3736 = vmatprep.mubr.msk.f32.mxu0 %vm4071_vm1, %v4070_v3  ;;  %3729 = vmatpush3.msra.mxu0 %v4301_v59 }
 0x5d8   :  { %3730 = vmatprep.subr.mxu0 %v4070_v3 }
 0x5d9   :  { %3731 = vmatpush3.msra.mxu0 %v4307_v60 }
 0x5da   :  { %3732 = vmatprep.subr.mxu0 %v4070_v3 }
 0x5db   :  { %3733 = vmatpush3.msra.mxu0 %v4316_v62 }
 0x5dc   :  { %3734 = vmatprep.subr.mxu0 %v4070_v3 }
 0x5dd   :  { %3735 = vmatpush3.msra.mxu0 %v4329_v0 }
 0x5de   :  { %3737 = vmatmul.mubr.f32.vlgmr.msra.gmra.mxu0 %v4070_v3  ;;  %3750 = vmatprep.subr.mxu0 %v4070_v3 }
 0x5df   :  { %3751 = vmatpush3.msra.mxu0 %v4301_v59  ;;  %3758 = vmatprep.mubr.msk.f32.mxu0 %vm4071_vm1, %v4070_v3 }
 0x5e0   :  { %3752 = vmatprep.subr.mxu0 %v4070_v3 }
 0x5e1   :  { %3753 = vmatpush3.msra.mxu0 %v4307_v60 }
 0x5e2   :  { %3754 = vmatprep.subr.mxu0 %v4070_v3 }
 0x5e3   :  { %3755 = vmatpush3.msra.mxu0 %v4316_v62 }
 0x5e4   :  { %3756 = vmatprep.subr.mxu0 %v4070_v3 }
 0x5e5   :  { %3757 = vmatpush3.msra.mxu0 %v4329_v0 }
 0x5e6   :  { %3772 = vmatprep.subr.mxu0 %v4070_v3 }
 0x696   :  { %v760_v1 = vpop.f32.mrf.mxu0 }
 0x697   :  { %v765_v2 = vrot.slane %v760_v1, 2 }
 0x698   :  { %v3716_v4 = vpop.f32.mrf.mxu0 }
 0x699   :  { %v767_v5 = vadd.f32 %v765_v2, %v4223_v11 }
 0x69b   :  { %3992 = vtanh.f32 %v767_v5 }
 0x69e   :  { %v940_v8 = vpop.f32.mrf.mxu0 }
 0x6a0   :  { %v3738_v9 = vpop.f32.mrf.mxu0 }
 0x6a8   :  { %v3993_v6 = vpop.eup %3992 }
 0x6a9   :  { %v777_v7 = vsel %vm773_vm5, %v776_v56, %v3993_v6 }
 0x6aa   :  { %3726 = vmatmul.mubr.msk.f32.vlgmr.msra.gmra.mxu1 %vm145_vm2, %v777_v7 }
 0x6ab   :  { %3740 = vmatpush3.msra.mxu1 %v4301_v59  ;;  %3747 = vmatprep.mubr.msk.f32.mxu1 %vm4071_vm1, %v4070_v3 }
 0x6ac   :  { %3741 = vmatprep.subr.mxu1 %v4070_v3 }
 0x6ad   :  { %3742 = vmatpush3.msra.mxu1 %v4307_v60 }
 0x6ae   :  { %3743 = vmatprep.subr.mxu1 %v4070_v3 }
 0x6af   :  { %3744 = vmatpush3.msra.mxu1 %v4316_v62 }
 0x6b0   :  { %3745 = vmatprep.subr.mxu1 %v4070_v3 }
 0x6b1   :  { %3746 = vmatpush3.msra.mxu1 %v4329_v0 }
 0x6b2   :  { %3761 = vmatprep.subr.mxu1 %v4070_v3 }
 0x76a   :  { %v3727_v11 = vpop.f32.mrf.mxu1 }
 0x76b   :  { %v4360_v12 = vadd.f32 %v3727_v11, %v3410_v10 }
 0x76c   :  { %v861_v13 = vpop.f32.mrf.mxu1 }
 0x76d   :  { %v862_v14 = vadd.f32 %v3410_v10, %v861_v13  ;;  %v1543_v13 = vld [vmem:[%s4708_s7 + $0x18] sm:$0xff] }
 0x76f   :  { %v944_v15 = vadd.f32 %v940_v8, %v862_v14 }
 0x771   :  { %3994 = vtanh.f32 %v944_v15  ;;  %v1541_v15 = vld [vmem:[%s4708_s7 + $0x8] sm:$0xff] }
 0x77e   :  { %v3995_v16 = vpop.eup %3994 }
 0x77f   :  { %3748 = vmatmul.mubr.msk.f32.vlgmr.msra.gmra.mxu1 %vm145_vm2, %v3995_v16  ;;  %v1509_v29 = vrot.slane %v3995_v16, 1 }
 0x780   :  { %3762 = vmatpush3.msra.mxu1 %v4301_v59  ;;  %3769 = vmatprep.mubr.msk.f32.mxu1 %vm4071_vm1, %v4070_v3 }
 0x781   :  { %3763 = vmatprep.subr.mxu1 %v4070_v3 }
 0x782   :  { %3764 = vmatpush3.msra.mxu1 %v4307_v60 }
 0x783   :  { %3765 = vmatprep.subr.mxu1 %v4070_v3 }
 0x784   :  { %3766 = vmatpush3.msra.mxu1 %v4316_v62 }
 0x785   :  { %3767 = vmatprep.subr.mxu1 %v4070_v3 }
 0x786   :  { %3768 = vmatpush3.msra.mxu1 %v4329_v0 }
 0x787   :  { %3783 = vmatprep.subr.mxu1 %v4070_v3 }
 0x83f   :  { %v1015_v17 = vpop.f32.mrf.mxu1 }
 0x840   :  { %v1020_v18 = vrot.slane %v1015_v17, 6 }
 0x841   :  { %v3749_v19 = vpop.f32.mrf.mxu1 }
 0x842   :  { %v1022_v20 = vadd.f32 %v1020_v18, %v862_v14 }
 0x844   :  { %3996 = vtanh.f32 %v1022_v20 }
 0x851   :  { %v3997_v21 = vpop.eup %3996 }
 0x852   :  { %v1025_v22 = vrot.slane %v3997_v21, 2  ;;  %v1494_v27 = vrot.slane %v3997_v21, 1 }
 0x854   :  { %3759 = vmatmul.mubr.msk.f32.vlgmr.msra.gmra.mxu0 %vm145_vm2, %v1025_v22  ;;  %v1533_v33 = vsel %vm1522_vm6, %v1509_v29, %v1025_v22  ;;  %v1523_v34 = vsel %vm1522_vm6, %v3995_v16, %v1494_v27  ;;  %v1540_v16 = vld [vmem:[%s4708_s7] sm:$0xff] }
 0x855   :  { %3773 = vmatpush3.msra.mxu0 %v4301_v59  ;;  %3780 = vmatprep.mubr.msk.f32.mxu0 %vm4071_vm1, %v4070_v3  ;;  %v3420_v27 = vld [vmem:[%s4709_s8] ss:$0 sm:$0xff]  ;;  %s4073_s8 = smov 96  }
 0x856   :  { %3774 = vmatprep.subr.mxu0 %v4070_v3 }
 0x857   :  { %3775 = vmatpush3.msra.mxu0 %v4307_v60 }
 0x858   :  { %3776 = vmatprep.subr.mxu0 %v4070_v3 }
 0x859   :  { %3777 = vmatpush3.msra.mxu0 %v4316_v62 }
 0x85a   :  { %3778 = vmatprep.subr.mxu0 %v4070_v3 }
 0x85b   :  { %3779 = vmatpush3.msra.mxu0 %v4329_v0 }
 0x85c   :  { %3794 = vmatprep.subr.mxu0 %v4070_v3 }
 0x914   :  { %v1094_v23 = vpop.f32.mrf.mxu0 }
 0x915   :  { %v1099_v24 = vrot.slane %v1094_v23, 4 }
 0x916   :  { %v3760_v25 = vpop.f32.mrf.mxu0 }
 0x917   :  { %v1101_v26 = vadd.f32 %v1099_v24, %v862_v14  ;;  %v1633_v25 = vld [vmem:[%s4710_s9 + $0x8] sm:$0xff] }
 0x919   :  { %3998 = vtanh.f32 %v1101_v26 }
 0x926   :  { %v3999_v28 = vpop.eup %3998 }
 0x927   :  { %v1104_v30 = vrot.slane %v3999_v28, 4  ;;  %v1496_v31 = vrot.slane %v3999_v28, 2  ;;  %v1512_v32 = vrot.slane %v3999_v28, 3 }
 0x929   :  { %3770 = vmatmul.mubr.msk.f32.vlgmr.msra.gmra.mxu1 %vm145_vm2, %v1104_v30  ;;  %v1524_v35 = vsel %vm769_vm3, %v1523_v34, %v1496_v31  ;;  %v1534_v36 = vsel %vm769_vm3, %v1533_v33, %v1512_v32  ;;  %v3423_v32 = vld [vmem:[%s4711_s10] ss:$0 sm:$0xff] }
 0x92a   :  { %3784 = vmatpush3.msra.mxu1 %v4301_v59  ;;  %3791 = vmatprep.mubr.msk.f32.mxu1 %vm4071_vm1, %v4070_v3 }
 0x92b   :  { %3785 = vmatprep.subr.mxu1 %v4070_v3 }
 0x92c   :  { %3786 = vmatpush3.msra.mxu1 %v4307_v60 }
 0x92d   :  { %3787 = vmatprep.subr.mxu1 %v4070_v3 }
 0x92e   :  { %3788 = vmatpush3.msra.mxu1 %v4316_v62 }
 0x92f   :  { %3789 = vmatprep.subr.mxu1 %v4070_v3 }
 0x930   :  { %3790 = vmatpush3.msra.mxu1 %v4329_v0 }
 0x931   :  { %3805 = vmatprep.subr.mxu1 %v4070_v3 }
 0x9e9   :  { %v1173_v37 = vpop.f32.mrf.mxu1 }
 0x9ea   :  { %v1178_v38 = vrot.slane %v1173_v37, 2 }
 0x9eb   :  { %v3771_v39 = vpop.f32.mrf.mxu1 }
 0x9ec   :  { %v1180_v40 = vadd.f32 %v1178_v38, %v862_v14  ;;  %v1542_v14 = vld [vmem:[%s4708_s7 + $0x10] sm:$0xff] }
 0x9ee   :  { %4000 = vtanh.f32 %v1180_v40 }
 0x9fb   :  { %v4001_v41 = vpop.eup %4000 }
 0x9fc   :  { %v1183_v42 = vrot.slane %v4001_v41, 6  ;;  %v1498_v43 = vrot.slane %v4001_v41, 3  ;;  %v1514_v44 = vrot.slane %v4001_v41, 4 }
 0x9fe   :  { %3781 = vmatmul.mubr.msk.f32.vlgmr.msra.gmra.mxu0 %vm145_vm2, %v1183_v42  ;;  %v1526_v45 = vsel %vm1525_vm7, %v1524_v35, %v1498_v43  ;;  %v1535_v46 = vsel %vm1525_vm7, %v1534_v36, %v1514_v44 }
 0x9ff   :  { %3795 = vmatpush3.msra.mxu0 %v4301_v59  ;;  %3802 = vmatprep.mubr.msk.f32.mxu0 %vm4071_vm1, %v4070_v3 }
 0xa00   :  { %3796 = vmatprep.subr.mxu0 %v4070_v3 }
 0xa01   :  { %3797 = vmatpush3.msra.mxu0 %v4307_v60 }
 0xa02   :  { %3798 = vmatprep.subr.mxu0 %v4070_v3 }
 0xa03   :  { %3799 = vmatpush3.msra.mxu0 %v4316_v62 }
 0xa04   :  { %3800 = vmatprep.subr.mxu0 %v4070_v3 }
 0xa05   :  { %3801 = vmatpush3.msra.mxu0 %v4329_v0 }
 0xa06   :  { %3816 = vmatprep.subr.mxu0 %v1543_v13 }
 0xabe   :  { %v1252_v47 = vpop.f32.mrf.mxu0 }
 0xabf   :  { %v1256_v48 = vadd.f32 %v1252_v47, %v4360_v12 }
 0xac0   :  { %v3782_v49 = vpop.f32.mrf.mxu0 }
 0xac1   :  { %4002 = vtanh.f32 %v1256_v48 }
 0xace   :  { %v4003_v50 = vpop.eup %4002 }
 0xacf   :  { %3792 = vmatmul.mubr.msk.f32.vlgmr.msra.gmra.mxu1 %vm145_vm2, %v4003_v50  ;;  %v1500_v51 = vrot.slane %v4003_v50, 4  ;;  %v1516_v52 = vrot.slane %v4003_v50, 5 }
 0xad0   :  { %3806 = vmatpush3.msra.mxu1 %v4301_v59  ;;  %3813 = vmatprep.mubr.msk.f32.mxu1 %vm4071_vm1, %v4070_v3 }
 0xad1   :  { %3807 = vmatprep.subr.mxu1 %v4070_v3  ;;  %v1527_v53 = vsel %vm771_vm4, %v1526_v45, %v1500_v51  ;;  %v1536_v54 = vsel %vm771_vm4, %v1535_v46, %v1516_v52 }
 0xad2   :  { %3808 = vmatpush3.msra.mxu1 %v4307_v60 }
 0xad3   :  { %3809 = vmatprep.subr.mxu1 %v4070_v3 }
 0xad4   :  { %3810 = vmatpush3.msra.mxu1 %v4316_v62 }
 0xad5   :  { %3811 = vmatprep.subr.mxu1 %v4070_v3 }
 0xad6   :  { %3812 = vmatpush3.msra.mxu1 %v4329_v0 }
 0xad7   :  { %3827 = vmatprep.subr.mxu1 %v1633_v25 }
 0xb8f   :  { %v1327_v55 = vpop.f32.mrf.mxu1 }
 0xb90   :  { %v1332_v56 = vrot.slane %v1327_v55, 6 }
 0xb91   :  { %v3793_v57 = vpop.f32.mrf.mxu1 }
 0xb92   :  { %v1334_v58 = vadd.f32 %v1332_v56, %v4360_v12 }
 0xb94   :  { %4004 = vtanh.f32 %v1334_v58 }
 0xba1   :  { %v4005_v59 = vpop.eup %4004 }
 0xba2   :  { %v1337_v61 = vrot.slane %v4005_v59, 2  ;;  %v1502_v63 = vrot.slane %v4005_v59, 5  ;;  %v1518_v1 = vrot.slane %v4005_v59, 6 }
 0xba4   :  { %3803 = vmatmul.mubr.msk.f32.vlgmr.msra.gmra.mxu0 %vm145_vm2, %v1337_v61  ;;  %v1529_v60 = vsel %vm1528_vm8, %v1527_v53, %v1502_v63  ;;  %v1537_v2 = vsel %vm1528_vm8, %v1536_v54, %v1518_v1  ;;  %v4479_v53 = vld [vmem:[%s4712_s11 + $0x8] sm:$0xff]  ;;  %v4484_v54 = vld [vmem:[%s4712_s11] sm:$0xff]  ;;  %v4500_v1 = vld [vmem:[%s4712_s11 + $0x18] sm:$0xff] }
 0xba5   :  { %3817 = vmatpush3.msra.mxu0 %v1543_v13  ;;  %v4559_v13 = vld [vmem:[%s4712_s11 + $0x58] sm:$0xff] }
 0xba6   :  { %3818 = vmatprep.subr.mxu0 %v1542_v14 }
 0xba7   :  { %3819 = vmatpush3.msra.mxu0 %v1542_v14 }
 0xba8   :  { %3820 = vmatprep.subr.mxu0 %v1541_v15 }
 0xba9   :  { %3821 = vmatpush3.msra.mxu0 %v1541_v15  ;;  %v4568_v15 = vld [vmem:[%s4712_s11 + $0x68] sm:$0xff] }
 0xbaa   :  { %3822 = vmatprep.subr.mxu0 %v1540_v16 }
 0xbab   :  { %3823 = vmatpush3.msra.mxu0 %v1540_v16  ;;  %v4576_v16 = vld [vmem:[%s4712_s11 + $0x50] sm:$0xff] }
 0xc64   :  { %v1406_v62 = vpop.f32.mrf.mxu0 }
 0xc65   :  { %v1411_v4 = vrot.slane %v1406_v62, 4 }
 0xc66   :  { %v3804_v5 = vpop.f32.mrf.mxu0 }
 0xc67   :  { %v1413_v0 = vadd.f32 %v1411_v4, %v4360_v12  ;;  %v4520_v5 = vld [vmem:[%s4712_s11 + $0x20] sm:$0xff] }
 0xc69   :  { %4006 = vtanh.f32 %v1413_v0  ;;  %v4525_v0 = vld [vmem:[%s4712_s11 + $0x38] sm:$0xff] }
 0xc76   :  { %v4007_v6 = vpop.eup %4006 }
 0xc77   :  { %v1416_v7 = vrot.slane %v4007_v6, 4  ;;  %v1504_v8 = vrot.slane %v4007_v6, 6  ;;  %v1520_v9 = vrot.slane %v4007_v6, 7 }
 0xc79   :  { %3814 = vmatmul.mubr.msk.f32.vlgmr.msra.gmra.mxu1 %vm145_vm2, %v1416_v7  ;;  %v1530_v10 = vsel %vm773_vm5, %v1529_v60, %v1504_v8  ;;  %v1538_v11 = vsel %vm773_vm5, %v1537_v2, %v1520_v9  ;;  %v4507_v60 = vld [vmem:[%s4712_s11 + $0x10] sm:$0xff]  ;;  %v4514_v2 = vld [vmem:[%s4712_s11 + $0x28] sm:$0xff] }
 0xc7a   :  { %3828 = vmatpush3.msra.mxu1 %v1633_v25  ;;  %v4535_v8 = vld [vmem:[%s4712_s11 + $0x48] sm:$0xff]  ;;  %v4542_v9 = vld [vmem:[%s4712_s11 + $0x30] sm:$0xff] }
 0xd39   :  { %v1485_v17 = vpop.f32.mrf.mxu1 }
 0xd3a   :  { %v1490_v18 = vrot.slane %v1485_v17, 2 }
 0xd3b   :  { %v3815_v19 = vpop.f32.mrf.mxu1 }
 0xd3c   :  { %v1492_v20 = vadd.f32 %v1490_v18, %v4360_v12  ;;  %v1632_v12 = vld [vmem:[%s4710_s9] sm:$0xff] }
 0xd3d   :  { %3829 = vmatprep.subr.mxu1 %v1632_v12  ;;  %v4585_v18 = vld [vmem:[%s4712_s11 + $0x60] sm:$0xff] }
 0xd3e   :  { %4008 = vtanh.f32 %v1492_v20  ;;  %3830 = vmatpush3.msra.mxu1 %v1632_v12  ;;  %v4593_v20 = vld [vmem:[%s4712_s11 + $0x78] sm:$0xff]  ;;  %v4628_v12 = vld [vmem:[%s4713_s12] sm:$0x1]  ;;  %s4074_s12 = smov [#allocation4]  }
 0xd3f   :  { %3839 = vmatprep.subr.mxu1 %v4070_v3 }
 0xd4b   :  { %v4009_v21 = vpop.eup %4008 }
 0xd4c   :  { %v1507_v22 = vrot.slane %v4009_v21, 7  ;;  %v1539_v24 = vsel %vm1531_vm9, %v1538_v11, %v4009_v21  ;;  %v4551_v11 = vld [vmem:[%s4712_s11 + $0x40] sm:$0xff] }
 0xd4e   :  { %v1532_v23 = vsel %vm1531_vm9, %v1530_v10, %v1507_v22 }
 0xd4f   :  { %3824 = vmatprep.mubr.msk.f32.mxu0 %vm145_vm2, %v1532_v23  ;;  %v4605_v23 = vld [vmem:[%s4712_s11 + $0x70] sm:$0xff] }
 0xd50   :  { %3825 = vmatmul.mubr.msk.f32.vlgmr.msra.gmra.mxu0 %vm145_vm2, %v1539_v24 }
 0xe10   :  { %v3826_v26 = vpop.f32.mrf.mxu0 }
 0xe11   :  { %v1629_v30 = vadd.f32 %v3826_v26, %v3420_v27 }
 0xe12   :  { %v1623_v28 = vpop.f32.mrf.mxu0 }
 0xe13   :  { %v1624_v29 = vadd.f32 %v3420_v27, %v1623_v28 }
 0xe15   :  { %3831 = vmatprep.mubr.msk.f32.mxu1 %vm59_vm0, %v1624_v29 }
 0xe16   :  { %3832 = vmatmul.mubr.msk.f32.vlgmr.msra.gmra.mxu1 %vm59_vm0, %v1629_v30 }
 0xe17   :  { %3843 = vmatprep.mubr.msk.f32.mxu1 %vm4071_vm1, %v4070_v3 }
 0xed6   :  { %v3833_v31 = vpop.f32.mrf.mxu1 }
 0xed7   :  { %v4461_v35 = vadd.f32 %v3833_v31, %v3423_v32 }
 0xed8   :  { %v1713_v33 = vpop.f32.mrf.mxu1 }
 0xed9   :  { %v1714_v34 = vadd.f32 %v3423_v32, %v1713_v33 }
 0xedb   :  { %1756 = vrot.lane.b32.xlu0 %v1714_v34, %s4072_s20 }
 0xef9   :  { %1723 = vxpose.xlu0.b32.start.end [1/1] (short) (narrow) %v1714_v34, 16 }
 0xefe   :  { %2552 = vxpose.xlu0.b32.start.end [1/1] (short) (narrow) %v4461_v35, 16 }
 0xf4d   :  { %v1757_v36 = vpop.permute.xlu0 %1756 }
 0xf4e   :  { %3834 = vmatprep.subr.mxu0 %v1757_v36 }
 0xf4f   :  { %3835 = vmatpush3.msra.mxu0 %v1757_v36 }
 0xf50   :  { %3846 = vmatprep.subr.mxu0 %v4070_v3 }
 0xf75   :  { %v1739_v37 = vpop.trf.xlu0 }
 0xf76   :  { %3836 = vmatprep.mubr.msk.f32.mxu0 %vm1759_vm10, %v1739_v37 }
 0xf79   :  { %v1740_v38 = vpop.trf.xlu0 }
 0xf7a   :  { %3837 = vmatmul.mubr.msk.f32.vlgmr.msra.gmra.mxu0 %vm1759_vm10, %v1740_v38 }
 0xf7b   :  { %3850 = vmatprep.mubr.msk.f32.mxu0 %vm4071_vm1, %v4070_v3  ;;  %3847 = vmatpush3.msra.mxu0 %v4479_v53 }
 0xf7c   :  { %3848 = vmatprep.subr.mxu0 %v4070_v3 }
 0xf7d   :  { %3849 = vmatpush3.msra.mxu0 %v4484_v54  ;;  %v2568_v19 = vpop.trf.xlu0 }
 0xf7e   :  { %3860 = vmatprep.subr.mxu0 %v4070_v3 }
 0xf81   :  { %v2569_v25 = vpop.trf.xlu0 }
0x103a   :  { %v3838_v39 = vpop.f32.mrf.mxu0 }
0x103b   :  { %v1844_v40 = vsel %vm59_vm0, %v3838_v39, -inf }
0x103c   :  { %1845 = vmax.xlane.f32.xlu1 %v1844_v40  ;;  %v1832_v41 = vpop.f32.mrf.mxu0 }
0x103d   :  { %v1841_v42 = vsel %vm59_vm0, %v1832_v41, -inf }
0x1040   :  { %1842 = vmax.xlane.f32.xlu1 %v1841_v42 }
0x10c5   :  { %v1846_v43 = vpop.xlane.xlu1 %1845 }
0x10c6   :  { %v1848_v44 = vsub.f32 %v3838_v39, %v1846_v43 }
0x10c8   :  { %v1851_v45 = vmul.f32 1.442695, %v1848_v44 }
0x10c9   :  { %v1843_v46 = vpop.xlane.xlu1 %1842 }
0x10ca   :  { %4010 = vpow2.f32 %v1851_v45  ;;  %v1847_v47 = vsub.f32 %v1832_v41, %v1843_v46 }
0x10cc   :  { %v1849_v48 = vmul.f32 1.442695, %v1847_v47 }
0x10ce   :  { %4012 = vpow2.f32 %v1849_v48 }
0x10d7   :  { %v4011_v49 = vpop.eup %4010 }
0x10d8   :  { %v1856_v50 = vsel %vm59_vm0, %v4011_v49, 0.0 }
0x10d9   :  { %1857 = vadd.xlane.f32.xlu1 %v1856_v50 }
0x10db   :  { %v4013_v51 = vpop.eup %4012 }
0x10dc   :  { %v1853_v52 = vsel %vm59_vm0, %v4013_v51, 0.0 }
0x10dd   :  { %1854 = vadd.xlane.f32.xlu1 %v1853_v52 }
0x10ee   :  { %1863 = vrot.lane.b32.xlu1 %v1714_v34, %s4073_s8 }
0x10f2   :  { %2585 = vrot.lane.b32.xlu1 %v4461_v35, %s4072_s20 }
0x1162   :  { %v1858_v55 = vpop.xlane.xlu1 %1857 }
0x1163   :  { %4014 = vrcp.f32 %v1858_v55 }
0x1166   :  { %v1855_v56 = vpop.xlane.xlu1 %1854 }
0x1167   :  { %4016 = vrcp.f32 %v1855_v56 }
0x116a   :  { %v1864_v63 = vpop.permute.xlu1 %1863 }
0x116e   :  { %v2586_v22 = vpop.permute.xlu1 %2585 }
0x1170   :  { %v4015_v57 = vpop.eup %4014 }
0x1171   :  { %v1862_v58 = vmul.f32 %v4015_v57, %v4011_v49 }
0x1173   :  { %3840 = vmatpush3.msra.mxu1 %v1862_v58  ;;  %3367 = vst.msk [vmem:[#allocation4 + $0x8] sm:$0xff] %vm59_vm0, %v1862_v58 }
0x1174   :  { %v4017_v59 = vpop.eup %4016  ;;  %3841 = vmatprep.subr.mxu1 %v4070_v3 }
0x1175   :  { %v1860_v61 = vmul.f32 %v4017_v59, %v4013_v51 }
0x1177   :  { %3842 = vmatpush3.msra.mxu1 %v1860_v61  ;;  %3366 = vst.msk [vmem:[#allocation4] sm:$0xff] %vm59_vm0, %v1860_v61 }
0x1178   :  { %3844 = vmatmul.mubr.msk.f32.vlgmr.msra.gmra.mxu1 %vm59_vm0, %v1864_v63  ;;  %3853 = vmatprep.subr.mxu1 %v4070_v3 }
0x1179   :  { %3857 = vmatprep.mubr.msk.f32.mxu1 %vm4071_vm1, %v4070_v3  ;;  %3854 = vmatpush3.msra.mxu1 %v4500_v1 }
0x117a   :  { %3855 = vmatprep.subr.mxu1 %v4070_v3 }
0x117b   :  { %3856 = vmatpush3.msra.mxu1 %v4507_v60 }
0x117c   :  { %3867 = vmatprep.subr.mxu1 %v4070_v3 }
0x1238   :  { %v1933_v62 = vpop.f32.mrf.mxu1 }
0x1239   :  { %3851 = vmatmul.mubr.msk.f32.vlgmr.msra.gmra.mxu0 %vm59_vm0, %v1933_v62  ;;  %v2016_v4 = vrot.slane %v1933_v62, 1  ;;  %v2093_v7 = vrot.slane %v1933_v62, 2  ;;  %v2170_v10 = vrot.slane %v1933_v62, 3  ;;  %v2247_v14 = vrot.slane %v1933_v62, 4 }
0x123a   :  { %3861 = vmatpush3.msra.mxu0 %v4514_v2  ;;  %v3845_v6 = vpop.f32.mrf.mxu1  ;;  %3864 = vmatprep.mubr.msk.f32.mxu0 %vm4071_vm1, %v4070_v3  ;;  %v2324_v17 = vrot.slane %v1933_v62, 5  ;;  %v2401_v21 = vrot.slane %v1933_v62, 6  ;;  %v2478_v24 = vrot.slane %v1933_v62, 7 }
0x123b   :  { %3862 = vmatprep.subr.mxu0 %v4070_v3  ;;  %3858 = vmatmul.mubr.msk.f32.vlgmr.msra.gmra.mxu1 %vm59_vm0, %v2016_v4 }
0x123c   :  { %3863 = vmatpush3.msra.mxu0 %v4520_v5  ;;  %3868 = vmatpush3.msra.mxu1 %v4525_v0 }
0x123d   :  { %3874 = vmatprep.subr.mxu0 %v4070_v3  ;;  %3865 = vmatmul.mubr.msk.f32.vlgmr.msra.gmra.mxu0 %vm59_vm0, %v2093_v7 }
0x123e   :  { %3869 = vmatprep.subr.mxu1 %v4070_v3  ;;  %3875 = vmatpush3.msra.mxu0 %v4535_v8 }
0x123f   :  { %3870 = vmatpush3.msra.mxu1 %v4542_v9  ;;  %3871 = vmatprep.mubr.msk.f32.mxu1 %vm4071_vm1, %v4070_v3 }
0x1240   :  { %3876 = vmatprep.subr.mxu0 %v4070_v3  ;;  %3872 = vmatmul.mubr.msk.f32.vlgmr.msra.gmra.mxu1 %vm59_vm0, %v2170_v10 }
0x1241   :  { %3877 = vmatpush3.msra.mxu0 %v4551_v11  ;;  %3881 = vmatprep.subr.mxu1 %v4070_v3 }
0x1242   :  { %3878 = vmatprep.mubr.msk.f32.mxu0 %vm4071_vm1, %v4070_v3  ;;  %3882 = vmatpush3.msra.mxu1 %v4559_v13 }
0x1243   :  { %3888 = vmatprep.subr.mxu0 %v4070_v3  ;;  %3879 = vmatmul.mubr.msk.f32.vlgmr.msra.gmra.mxu0 %vm59_vm0, %v2247_v14 }
0x1244   :  { %3883 = vmatprep.subr.mxu1 %v4070_v3  ;;  %3889 = vmatpush3.msra.mxu0 %v4568_v15 }
0x1245   :  { %3884 = vmatpush3.msra.mxu1 %v4576_v16  ;;  %3885 = vmatprep.mubr.msk.f32.mxu1 %vm4071_vm1, %v4070_v3 }
0x1246   :  { %3890 = vmatprep.subr.mxu0 %v4070_v3  ;;  %3886 = vmatmul.mubr.msk.f32.vlgmr.msra.gmra.mxu1 %vm59_vm0, %v2324_v17 }
0x1247   :  { %3891 = vmatpush3.msra.mxu0 %v4585_v18  ;;  %3895 = vmatprep.subr.mxu1 %v4070_v3 }
0x1248   :  { %3892 = vmatprep.mubr.msk.f32.mxu0 %vm4071_vm1, %v4070_v3  ;;  %3896 = vmatpush3.msra.mxu1 %v4593_v20 }
0x1249   :  { %3902 = vmatprep.subr.mxu0 %v2586_v22  ;;  %3893 = vmatmul.mubr.msk.f32.vlgmr.msra.gmra.mxu0 %vm59_vm0, %v2401_v21 }
0x124a   :  { %3897 = vmatprep.subr.mxu1 %v4070_v3  ;;  %3903 = vmatpush3.msra.mxu0 %v2586_v22 }
0x124b   :  { %3898 = vmatpush3.msra.mxu1 %v4605_v23  ;;  %3899 = vmatprep.mubr.msk.f32.mxu1 %vm4071_vm1, %v4070_v3 }
0x124c   :  { %3904 = vmatprep.mubr.msk.f32.mxu0 %vm1759_vm10, %v2568_v19  ;;  %3900 = vmatmul.mubr.msk.f32.vlgmr.msra.gmra.mxu1 %vm59_vm0, %v2478_v24 }
0x124d   :  { %3905 = vmatmul.mubr.msk.f32.vlgmr.msra.gmra.mxu0 %vm1759_vm10, %v2569_v25  ;;  %3907 = vmatprep.subr.mxu1 %v4070_v3 }
0x124e   :  { %3911 = vmatprep.mubr.msk.f32.mxu1 %vm4071_vm1, %v4070_v3  ;;  %3914 = vmatprep.subr.mxu0 %v4070_v3 }
0x124f   :  { %3915 = vmatpush3.msra.mxu0 %v4479_v53  ;;  %3918 = vmatprep.mubr.msk.f32.mxu0 %vm4071_vm1, %v4070_v3 }
0x1250   :  { %3916 = vmatprep.subr.mxu0 %v4070_v3 }
0x1251   :  { %3917 = vmatpush3.msra.mxu0 %v4484_v54 }
0x1252   :  { %3928 = vmatprep.subr.mxu0 %v4070_v3 }
0x12f9   :  { %v2008_v26 = vpop.f32.mrf.mxu0 }
0x12fa   :  { %v2012_v27 = vadd.f32 %v2008_v26, %v4628_v12 }
0x12fb   :  { %v3852_v28 = vpop.f32.mrf.mxu0  ;;  %v2085_v29 = vpop.f32.mrf.mxu1 }
0x12fc   :  { %v2089_v30 = vadd.f32 %v2085_v29, %v2012_v27 }
0x12fd   :  { %v3859_v31 = vpop.f32.mrf.mxu1  ;;  %v2162_v32 = vpop.f32.mrf.mxu0 }
0x12fe   :  { %v2166_v33 = vadd.f32 %v2162_v32, %v2089_v30 }
0x12ff   :  { %v3866_v34 = vpop.f32.mrf.mxu0 }
0x1300   :  { %v2239_v36 = vpop.f32.mrf.mxu1 }
0x1301   :  { %v2243_v37 = vadd.f32 %v2239_v36, %v2166_v33 }
0x1302   :  { %v3873_v38 = vpop.f32.mrf.mxu1 }
0x1303   :  { %v2316_v39 = vpop.f32.mrf.mxu0 }
0x1304   :  { %v2320_v40 = vadd.f32 %v2316_v39, %v2243_v37 }
0x1305   :  { %v3880_v41 = vpop.f32.mrf.mxu0 }
0x1306   :  { %v2393_v42 = vpop.f32.mrf.mxu1 }
0x1307   :  { %v2397_v43 = vadd.f32 %v2393_v42, %v2320_v40 }
0x1308   :  { %v3887_v44 = vpop.f32.mrf.mxu1 }
0x1309   :  { %v2470_v45 = vpop.f32.mrf.mxu0 }
0x130a   :  { %v2474_v46 = vadd.f32 %v2470_v45, %v2397_v43 }
0x130b   :  { %v3894_v47 = vpop.f32.mrf.mxu0 }
0x130c   :  { %v2547_v48 = vpop.f32.mrf.mxu1 }
0x130d   :  { %v4631_v49 = vadd.f32 %v2547_v48, %v2474_v46  ;;  %v3906_v50 = vpop.f32.mrf.mxu0 }
0x130e   :  { %v3901_v51 = vpop.f32.mrf.mxu1  ;;  %v2672_v52 = vsel %vm59_vm0, %v3906_v50, -inf }
0x130f   :  { %2673 = vmax.xlane.f32.xlu1 %v2672_v52  ;;  %v2660_v53 = vpop.f32.mrf.mxu0 }
0x1310   :  { %v2669_v54 = vsel %vm59_vm0, %v2660_v53, -inf }
0x1311   :  { %2670 = vmax.xlane.f32.xlu0 %v2669_v54 }
0x1398   :  { %v2674_v55 = vpop.xlane.xlu1 %2673 }
0x1399   :  { %v2676_v56 = vsub.f32 %v3906_v50, %v2674_v55 }
0x139a   :  { %v2671_v57 = vpop.xlane.xlu0 %2670 }
0x139b   :  { %v2679_v58 = vmul.f32 1.442695, %v2676_v56  ;;  %v2675_v59 = vsub.f32 %v2660_v53, %v2671_v57 }
0x139d   :  { %4018 = vpow2.f32 %v2679_v58  ;;  %v2677_v61 = vmul.f32 1.442695, %v2675_v59 }
0x139f   :  { %4020 = vpow2.f32 %v2677_v61 }
0x13aa   :  { %v4019_v63 = vpop.eup %4018 }
0x13ab   :  { %v2684_v62 = vsel %vm59_vm0, %v4019_v63, 0.0 }
0x13ac   :  { %v4021_v4 = vpop.eup %4020  ;;  %2685 = vadd.xlane.f32.xlu1 %v2684_v62 }
0x13ad   :  { %v2681_v6 = vsel %vm59_vm0, %v4021_v4, 0.0 }
0x13b0   :  { %2682 = vadd.xlane.f32.xlu1 %v2681_v6 }
0x13c1   :  { %2691 = vrot.lane.b32.xlu1 %v4461_v35, %s4073_s8  ;;  %s3385_s8 = sshll.u32 %s4074_s12, 4  ;;  %s3386_s8 = int_to_ptr.vmem [resolvable:$true] %s3385_s8 }
0x13c2   :  { %s4026_s4 = scalar_lea.vmem %s3386_s8, 512  ;;  %p4031_p1 = scmp.lt.s32.totalorder %s3386_s8, %s3386_s8 }
0x13c3   :  { %p4027_p0 = scmp.ne.s32.totalorder %s3386_s8, %s4026_s4  ;;  %p4032_p2 = scmp.lt.s32.totalorder %s4026_s4, %s4026_s4 }
0x13c5   :  { %p4033_p3 = por %p4032_p2, %p4031_p1 }
0x13c7   :  { %p4034_p4 = pnand %p4033_p3, %p4027_p0 }
0x1435   :  { %v2686_v7 = vpop.xlane.xlu1 %2685 }
0x1436   :  { %4022 = vrcp.f32 %v2686_v7 }
0x1439   :  { %v2683_v10 = vpop.xlane.xlu1 %2682 }
0x143a   :  { %4024 = vrcp.f32 %v2683_v10 }
0x143d   :  { %v2692_v22 = vpop.permute.xlu1 %2691 }
0x1443   :  { %v4023_v14 = vpop.eup %4022 }
0x1444   :  { %v2690_v17 = vmul.f32 %v4023_v14, %v4019_v63 }
0x1446   :  { %3908 = vmatpush3.msra.mxu1 %v2690_v17  ;;  %3369 = vst.msk [vmem:[#allocation4 + $0x18] sm:$0xff] %vm59_vm0, %v2690_v17 }
0x1447   :  { %v4025_v19 = vpop.eup %4024  ;;  %3909 = vmatprep.subr.mxu1 %v4070_v3 }
0x1448   :  { %v2688_v21 = vmul.f32 %v4025_v19, %v4021_v4 }
0x144a   :  { %3910 = vmatpush3.msra.mxu1 %v2688_v21  ;;  %3368 = vst.msk [vmem:[#allocation4 + $0x10] sm:$0xff] %vm59_vm0, %v2688_v21 }
0x144b   :  { %3912 = vmatmul.mubr.msk.f32.vlgmr.msra.gmra.mxu1 %vm59_vm0, %v2692_v22  ;;  %3921 = vmatprep.subr.mxu1 %v4070_v3 }
0x144c   :  { %3922 = vmatpush3.msra.mxu1 %v4500_v1  ;;  %3925 = vmatprep.mubr.msk.f32.mxu1 %vm4071_vm1, %v4070_v3 }
0x144d   :  { %3923 = vmatprep.subr.mxu1 %v4070_v3 }
0x144e   :  { %3924 = vmatpush3.msra.mxu1 %v4507_v60 }
0x144f   :  { %3935 = vmatprep.subr.mxu1 %v4070_v3 }
0x150b   :  { %v2761_v35 = vpop.f32.mrf.mxu1 }
0x150c   :  { %3919 = vmatmul.mubr.msk.f32.vlgmr.msra.gmra.mxu0 %vm59_vm0, %v2761_v35  ;;  %v2839_v24 = vrot.slane %v2761_v35, 1  ;;  %v2913_v1 = vrot.slane %v2761_v35, 2  ;;  %v2987_v60 = vrot.slane %v2761_v35, 3 }
0x150d   :  { %v3913_v25 = vpop.f32.mrf.mxu1  ;;  %3929 = vmatpush3.msra.mxu0 %v4514_v2  ;;  %3932 = vmatprep.mubr.msk.f32.mxu0 %vm4071_vm1, %v4070_v3  ;;  %v3061_v2 = vrot.slane %v2761_v35, 4 }
0x150e   :  { %3926 = vmatmul.mubr.msk.f32.vlgmr.msra.gmra.mxu1 %vm59_vm0, %v2839_v24  ;;  %3930 = vmatprep.subr.mxu0 %v4070_v3 }
0x150f   :  { %3931 = vmatpush3.msra.mxu0 %v4520_v5  ;;  %3936 = vmatpush3.msra.mxu1 %v4525_v0  ;;  %v3135_v5 = vrot.slane %v2761_v35, 5  ;;  %v3209_v0 = vrot.slane %v2761_v35, 6 }
0x1510   :  { %3933 = vmatmul.mubr.msk.f32.vlgmr.msra.gmra.mxu0 %vm59_vm0, %v2913_v1  ;;  %3937 = vmatprep.subr.mxu1 %v4070_v3 }
0x1511   :  { %3942 = vmatprep.subr.mxu0 %v4070_v3  ;;  %3938 = vmatpush3.msra.mxu1 %v4542_v9 }
0x1512   :  { %3939 = vmatprep.mubr.msk.f32.mxu1 %vm4071_vm1, %v4070_v3  ;;  %3943 = vmatpush3.msra.mxu0 %v4535_v8  ;;  %v3283_v8 = vrot.slane %v2761_v35, 7 }
0x1513   :  { %3940 = vmatmul.mubr.msk.f32.vlgmr.msra.gmra.mxu1 %vm59_vm0, %v2987_v60  ;;  %3944 = vmatprep.subr.mxu0 %v4070_v3 }
0x1514   :  { %3949 = vmatprep.subr.mxu1 %v4070_v3  ;;  %3945 = vmatpush3.msra.mxu0 %v4551_v11 }
0x1515   :  { %3946 = vmatprep.mubr.msk.f32.mxu0 %vm4071_vm1, %v4070_v3  ;;  %3950 = vmatpush3.msra.mxu1 %v4559_v13 }
0x1516   :  { %3947 = vmatmul.mubr.msk.f32.vlgmr.msra.gmra.mxu0 %vm59_vm0, %v3061_v2  ;;  %3951 = vmatprep.subr.mxu1 %v4070_v3 }
0x1517   :  { %3956 = vmatprep.subr.mxu0 %v4070_v3  ;;  %3952 = vmatpush3.msra.mxu1 %v4576_v16 }
0x1518   :  { %3953 = vmatprep.mubr.msk.f32.mxu1 %vm4071_vm1, %v4070_v3  ;;  %3957 = vmatpush3.msra.mxu0 %v4568_v15 }
0x1519   :  { %3954 = vmatmul.mubr.msk.f32.vlgmr.msra.gmra.mxu1 %vm59_vm0, %v3135_v5  ;;  %3958 = vmatprep.subr.mxu0 %v4070_v3 }
0x151a   :  { %3963 = vmatprep.subr.mxu1 %v4070_v3  ;;  %3959 = vmatpush3.msra.mxu0 %v4585_v18 }
0x151b   :  { %3960 = vmatprep.mubr.msk.f32.mxu0 %vm4071_vm1, %v4070_v3  ;;  %3964 = vmatpush3.msra.mxu1 %v4593_v20 }
0x151c   :  { %3961 = vmatmul.mubr.msk.f32.vlgmr.msra.gmra.mxu0 %vm59_vm0, %v3209_v0  ;;  %3965 = vmatprep.subr.mxu1 %v4070_v3 }
0x151d   :  { %3966 = vmatpush3.msra.mxu1 %v4605_v23  ;;  %3967 = vmatprep.mubr.msk.f32.mxu1 %vm4071_vm1, %v4070_v3 }
0x151e   :  { %3968 = vmatmul.mubr.msk.f32.vlgmr.msra.gmra.mxu1 %vm59_vm0, %v3283_v8 }
0x151f   :  { %4037 = shalt.err (!%p4034_p4)
}
0x1520   :  { %s4075_s5 = smov 128   ;;  %s4076_s6 = smov 8   ;;  %v3358_v29 = vlaneseq  ;;  %vm3364_vm11 = vcmask 58368  }
0x1521   :  { %3391 = dma.vmem_to_hbm [thread:$0]  %s3386_s8, 512, %s4715_s14, [#allocation5], %s4075_s5, %s4075_s5, %s4076_s6  }
0x1522   :  { %v3359_v34 = vshrl.u32 %v3358_v29, 7  ;;  %s4077_s14 = smov [#allocation2]  }
0x1523   :  { %s3376_s2 = sshll.u32 %s4077_s14, 4  ;;  %s3377_s2 = int_to_ptr.vmem [resolvable:$true] %s3376_s2 }
0x1524   :  { %v3360_v39 = vsub.s32 0, %v3359_v34  ;;  %s4046_s27 = scalar_lea.vmem %s3377_s2, 32  ;;  %p4051_p6 = scmp.lt.s32.totalorder %s3377_s2, %s3377_s2 }
0x1525   :  { %p4047_p5 = scmp.ne.s32.totalorder %s3377_s2, %s4046_s27  ;;  %p4052_p7 = scmp.lt.s32.totalorder %s4046_s27, %s4046_s27 }
0x1527   :  { %p4053_p8 = por %p4052_p7, %p4051_p6 }
0x1529   :  { %p4054_p9 = pnand %p4053_p8, %p4047_p5 }
0x15cc   :  { %v2834_v9 = vpop.f32.mrf.mxu0 }
0x15cd   :  { %v2838_v3 = vadd.f32 %v2834_v9, %v4628_v12 }
0x15ce   :  { %v3920_v11 = vpop.f32.mrf.mxu0  ;;  %v2908_v13 = vpop.f32.mrf.mxu1 }
0x15cf   :  { %v2912_v15 = vadd.f32 %v2908_v13, %v2838_v3 }
0x15d0   :  { %v3927_v16 = vpop.f32.mrf.mxu1  ;;  %v2982_v18 = vpop.f32.mrf.mxu0 }
0x15d1   :  { %v2986_v20 = vadd.f32 %v2982_v18, %v2912_v15 }
0x15d2   :  { %v3934_v23 = vpop.f32.mrf.mxu0 }
0x15d3   :  { %v3056_v26 = vpop.f32.mrf.mxu1 }
0x15d4   :  { %v3060_v27 = vadd.f32 %v3056_v26, %v2986_v20 }
0x15d5   :  { %v3941_v28 = vpop.f32.mrf.mxu1 }
0x15d6   :  { %v3130_v30 = vpop.f32.mrf.mxu0 }
0x15d7   :  { %v3134_v31 = vadd.f32 %v3130_v30, %v3060_v27 }
0x15d8   :  { %v3948_v32 = vpop.f32.mrf.mxu0 }
0x15d9   :  { %v3204_v33 = vpop.f32.mrf.mxu1 }
0x15da   :  { %v3208_v36 = vadd.f32 %v3204_v33, %v3134_v31 }
0x15db   :  { %v3955_v37 = vpop.f32.mrf.mxu1 }
0x15dc   :  { %v3278_v38 = vpop.f32.mrf.mxu0 }
0x15dd   :  { %v3282_v12 = vadd.f32 %v3278_v38, %v3208_v36 }
0x15de   :  { %v3962_v40 = vpop.f32.mrf.mxu0  ;;  %v3352_v41 = vpop.f32.mrf.mxu1 }
0x15df   :  { %v3356_v42 = vadd.f32 %v3352_v41, %v3282_v12 }
0x15e0   :  { %v3969_v43 = vpop.f32.mrf.mxu1 }
0x15e1   :  { %v3361_v44 = vrot.slane %v3356_v42, %v3360_v39 }
0x15e3   :  { %v3363_v45 = vsel %vm1522_vm6, %v4631_v49, %v3361_v44 }
0x15e4   :  { %3365 = vst.msk [vmem:[#allocation2] sm:$0x3] %vm3364_vm11, %v3363_v45 }
0x15e5   :  { %4057 = shalt.err (!%p4054_p9)
}
0x15e6   :  { %3379 = dma.vmem_to_hbm [thread:$0]  %s3377_s2, 32, %s4714_s13, [#allocation3]  }
0x15e7   :  { %4066 = dma.done.wait [#allocation3], 32  }
0x15e8   :  { %4067 = vsyncadd [#allocation3], 4294967264 }
0x15e9   :  { %4068 = dma.done.wait [#allocation5], 512  }
0x15ea   :  { %4069 = vsyncadd [#allocation5], 4294966784 }
0x15eb   :  { %3398 = vsyncpa [#allocation3], 1 }
0x15ec   :  { %3399 = vsyncpa [#allocation5], 1 }

</bundles_post_ra>
